<compile_context>
chip_gen: v6e
topology: v6e:2x2x1
jax: 0.10.0
libtpu: 0.0.40
codegen_flags: <defaults>
</compile_context>

<pallas_src>
import functools

import jax
import jax.numpy as jnp
from jax.experimental import pallas as pl
from jax.experimental.pallas import tpu as pltpu

LN_EPS = 1e-5


def _ln_packed_kernel(x_ref, g_ref, b_ref, seg_ref, o_ref, *, d):
    # x_ref: (TILE, 128); each row packs 128//d logical rows of length d.
    # g_ref/b_ref: (1, 128) weight/bias tiled across the packed segments.
    # seg_ref: (128, 128) block-diagonal ones; seg[i, j] = (i // d == j // d).
    x = x_ref[...].astype(jnp.float32)
    seg = seg_ref[...]
    inv_d = jnp.float32(1.0 / d)
    # Segmented sums on the MXU; the block-diagonal ones matrix broadcasts each
    # segment's sum back to all of that segment's lanes.
    mean = jnp.dot(x, seg, preferred_element_type=jnp.float32,
                   precision=jax.lax.Precision.HIGHEST) * inv_d
    c = x - mean
    var = jnp.dot(c * c, seg, preferred_element_type=jnp.float32,
                  precision=jax.lax.Precision.HIGHEST) * inv_d
    y = (c * jax.lax.rsqrt(var + LN_EPS)) * g_ref[...].astype(jnp.float32) \
        + b_ref[...].astype(jnp.float32)
    o_ref[...] = y.astype(o_ref.dtype)


def _ln_rows_kernel(x_ref, g_ref, b_ref, o_ref):
    # Fallback: one logical row per block row. x_ref: (TILE, D), g/b: (1, D).
    x = x_ref[...].astype(jnp.float32)
    mean = jnp.mean(x, axis=-1, keepdims=True)
    c = x - mean
    var = jnp.mean(c * c, axis=-1, keepdims=True)
    y = c * jax.lax.rsqrt(var + LN_EPS) * g_ref[...].astype(jnp.float32) \
        + b_ref[...].astype(jnp.float32)
    o_ref[...] = y.astype(o_ref.dtype)


def _pick_tile(n_rows, row_dim, itemsize, *, vmem_budget_bytes=24 << 20,
               target_steps=8, hard_cap=8192):
    # Per-row VMEM: double-buffered in + out blocks (input dtype) plus ~5 live
    # f32 temporaries inside the kernel body.
    per_row = 4 * row_dim * itemsize + 5 * row_dim * 4
    max_tile = max(8, ((vmem_budget_bytes // per_row) // 8) * 8)
    # Keep >= target_steps grid steps for large inputs (feeds both v7x cores /
    # keeps double-buffering busy), but never shrink below ~256 rows for that.
    by_steps = max(256, ((pl.cdiv(n_rows, target_steps) + 7) // 8) * 8)
    full = ((n_rows + 7) // 8) * 8
    return max(8, min(max_tile, hard_cap, by_steps, full))


def with_bias_layer_norm(x, weight, bias):
    """LayerNorm over the last dim of x. weight/bias: (D,). Same shape/dtype as x."""
    orig_shape = x.shape
    D = orig_shape[-1]
    N = 1
    for s in orig_shape[:-1]:
        N *= s
    itemsize = jnp.dtype(x.dtype).itemsize

    pack = 128 // D if (D < 128 and 128 % D == 0) else 1
    if pack > 1 and N % pack == 0:
        # ---------- lane-dense packed path (D=32 for this model => pack=4) ----------
        Dp = pack * D                       # == 128
        rows = N // pack
        xm = x.reshape(rows, Dp)            # free contiguous view, no HBM pass
        g2 = jnp.tile(weight.reshape(1, D), (1, pack))
        b2 = jnp.tile(bias.reshape(1, D), (1, pack))
        lane = jnp.arange(Dp, dtype=jnp.int32) // D
        seg = (lane[:, None] == lane[None, :]).astype(jnp.float32)

        tile = _pick_tile(rows, Dp, itemsize)
        block_bytes = tile * Dp * (4 * itemsize + 5 * 4)
        vmem_limit = int(min(max(block_bytes + (4 << 20), 8 << 20), 32 << 20))

        out = pl.pallas_call(
            functools.partial(_ln_packed_kernel, d=D),
            out_shape=jax.ShapeDtypeStruct((rows, Dp), x.dtype),
            grid_spec=pltpu.PrefetchScalarGridSpec(
                num_scalar_prefetch=0,
                grid=(pl.cdiv(rows, tile),),
                in_specs=[
                    pl.BlockSpec((tile, Dp), lambda i: (i, 0)),
                    pl.BlockSpec((1, Dp), lambda i: (0, 0)),
                    pl.BlockSpec((1, Dp), lambda i: (0, 0)),
                    pl.BlockSpec((Dp, Dp), lambda i: (0, 0)),
                ],
                out_specs=pl.BlockSpec((tile, Dp), lambda i: (i, 0)),
            ),
            compiler_params=pltpu.CompilerParams(
                dimension_semantics=("parallel",),
                vmem_limit_bytes=vmem_limit,
            ),
        )(xm, g2, b2, seg)
        return out.reshape(orig_shape)

    # ---------- general fallback path (one logical row per block row) ----------
    xm = x.reshape(N, D)
    g2 = weight.reshape(1, D)
    b2 = bias.reshape(1, D)
    tile = _pick_tile(N, D, itemsize)
    block_bytes = tile * D * (4 * itemsize + 5 * 4)
    vmem_limit = int(min(max(block_bytes + (4 << 20), 8 << 20), 32 << 20))

    out = pl.pallas_call(
        _ln_rows_kernel,
        out_shape=jax.ShapeDtypeStruct((N, D), x.dtype),
        grid_spec=pltpu.PrefetchScalarGridSpec(
            num_scalar_prefetch=0,
            grid=(pl.cdiv(N, tile),),
            in_specs=[
                pl.BlockSpec((tile, D), lambda i: (i, 0)),
                pl.BlockSpec((1, D), lambda i: (0, 0)),
                pl.BlockSpec((1, D), lambda i: (0, 0)),
            ],
            out_specs=pl.BlockSpec((tile, D), lambda i: (i, 0)),
        ),
        compiler_params=pltpu.CompilerParams(
            dimension_semantics=("parallel",),
            vmem_limit_bytes=vmem_limit,
        ),
    )(xm, g2, b2)
    return out.reshape(orig_shape)


def _reference(x, weight, bias):
    mu = jnp.mean(x, axis=-1, keepdims=True)
    var = jnp.mean((x - mu) ** 2, axis=-1, keepdims=True)
    return (x - mu) / jnp.sqrt(var + LN_EPS) * weight + bias


if __name__ == "__main__":
    key = jax.random.PRNGKey(0)
    k_x, k_g, k_b = jax.random.split(key, 3)

    # batch=2, seq = 16*16 = 256 tokens, hidden = 32 (normalized_shape = 32).
    B, S, D = 2, 256, 32
    x = jax.random.normal(k_x, (B, S, D), dtype=jnp.float32)

    # Module init is ones/zeros; use perturbed params so the test is non-trivial.
    weight = 1.0 + 0.1 * jax.random.normal(k_g, (D,), dtype=jnp.float32)
    bias = 0.1 * jax.random.normal(k_b, (D,), dtype=jnp.float32)

    out = with_bias_layer_norm(x, weight, bias)
    out = jax.block_until_ready(out)

    ref = _reference(x, weight, bias)
    assert out.shape == x.shape, out.shape
    assert out.dtype == x.dtype, out.dtype
    err = float(jnp.max(jnp.abs(out - ref)))
    assert jnp.allclose(out, ref, atol=1e-4, rtol=1e-4), err

    # Also exercise the general fallback path (D that does not divide 128).
    D2 = 160
    x2 = jax.random.normal(k_x, (2, 64, D2), dtype=jnp.float32)
    w2 = 1.0 + 0.1 * jax.random.normal(k_g, (D2,), dtype=jnp.float32)
    b2 = 0.1 * jax.random.normal(k_b, (D2,), dtype=jnp.float32)
    out2 = jax.block_until_ready(with_bias_layer_norm(x2, w2, b2))
    assert jnp.allclose(out2, _reference(x2, w2, b2), atol=1e-4, rtol=1e-4)

    print("KERNEL_OK")
</pallas_src>

<mosaic_0001>
module attributes {stable_mosaic.version = 11 : i64} {
  func.func @_ln_packed_kernel(%arg0: i32, %arg1: memref<128x128xf32, #tpu.memory_space<vmem>>, %arg2: memref<1x128xf32, #tpu.memory_space<vmem>>, %arg3: memref<1x128xf32, #tpu.memory_space<vmem>>, %arg4: memref<128x128xf32, #tpu.memory_space<vmem>>, %arg5: memref<128x128xf32, #tpu.memory_space<vmem>>) attributes {dimension_semantics = [#tpu.dimension_semantics<parallel>], iteration_bounds = array<i64: 1>, scalar_prefetch = 0 : i64, scratch_operands = 0 : i64, tpu.core_type = #tpu.core_type<tc>, window_params = [{transform_indices = @transform_0, window_bounds = array<i64: 128, 128>}, {pipeline_mode = #tpu.pipeline_mode<synchronous>, transform_indices = @transform_1, window_bounds = array<i64: 1, 128>}, {pipeline_mode = #tpu.pipeline_mode<synchronous>, transform_indices = @transform_2, window_bounds = array<i64: 1, 128>}, {pipeline_mode = #tpu.pipeline_mode<synchronous>, transform_indices = @transform_3, window_bounds = array<i64: 128, 128>}, {transform_indices = @transform_4, window_bounds = array<i64: 128, 128>}]} {
    %c0 = arith.constant 0 : index
    %c0_0 = arith.constant 0 : index
    %0 = vector.load %arg1[%c0, %c0_0] : memref<128x128xf32, #tpu.memory_space<vmem>>, vector<128x128xf32>
    %c0_1 = arith.constant 0 : index
    %c0_2 = arith.constant 0 : index
    %1 = vector.load %arg4[%c0_1, %c0_2] : memref<128x128xf32, #tpu.memory_space<vmem>>, vector<128x128xf32>
    %cst = arith.constant dense<0.000000e+00> : vector<128x128xf32>
    %2 = tpu.matmul %0, %1, %cst {dimension_numbers = #tpu.dot_dimension_numbers<[1], [0], [0], [1], [0, 0, 1, 1], [], []>, precision = #tpu.contract_precision<fp32>} : vector<128x128xf32>, vector<128x128xf32>, vector<128x128xf32> -> vector<128x128xf32>
    %cst_3 = arith.constant 3.125000e-02 : f32
    %3 = vector.broadcast %cst_3 : f32 to vector<128x128xf32>
    %4 = arith.mulf %2, %3 : vector<128x128xf32>
    %5 = arith.subf %0, %4 : vector<128x128xf32>
    %6 = arith.mulf %5, %5 : vector<128x128xf32>
    %cst_4 = arith.constant dense<0.000000e+00> : vector<128x128xf32>
    %7 = tpu.matmul %6, %1, %cst_4 {dimension_numbers = #tpu.dot_dimension_numbers<[1], [0], [0], [1], [0, 0, 1, 1], [], []>, precision = #tpu.contract_precision<fp32>} : vector<128x128xf32>, vector<128x128xf32>, vector<128x128xf32> -> vector<128x128xf32>
    %cst_5 = arith.constant 3.125000e-02 : f32
    %8 = vector.broadcast %cst_5 : f32 to vector<128x128xf32>
    %9 = arith.mulf %7, %8 : vector<128x128xf32>
    %cst_6 = arith.constant 9.99999974E-6 : f32
    %10 = vector.broadcast %cst_6 : f32 to vector<128x128xf32>
    %11 = arith.addf %9, %10 : vector<128x128xf32>
    %12 = math.rsqrt %11 : vector<128x128xf32>
    %13 = arith.mulf %5, %12 : vector<128x128xf32>
    %c0_7 = arith.constant 0 : index
    %c0_8 = arith.constant 0 : index
    %14 = vector.load %arg2[%c0_7, %c0_8] : memref<1x128xf32, #tpu.memory_space<vmem>>, vector<1x128xf32>
    %15 = vector.broadcast %14 : vector<1x128xf32> to vector<128x128xf32>
    %16 = arith.mulf %13, %15 : vector<128x128xf32>
    %c0_9 = arith.constant 0 : index
    %c0_10 = arith.constant 0 : index
    %17 = vector.load %arg3[%c0_9, %c0_10] : memref<1x128xf32, #tpu.memory_space<vmem>>, vector<1x128xf32>
    %18 = vector.broadcast %17 : vector<1x128xf32> to vector<128x128xf32>
    %19 = arith.addf %16, %18 : vector<128x128xf32>
    %c0_11 = arith.constant 0 : index
    %c0_12 = arith.constant 0 : index
    %20 = vector.load %arg5[%c0_11, %c0_12] : memref<128x128xf32, #tpu.memory_space<vmem>>, vector<128x128xf32>
    tpu.vector_store %arg5[%c0_11, %c0_12], %19 {strides = array<i32>} : memref<128x128xf32, #tpu.memory_space<vmem>>, vector<128x128xf32>,
    return
  }
  func.func @transform_0(%arg0: i32) -> (i32, i32) {
    %c0_i32 = arith.constant 0 : i32
    %c0_i32_0 = arith.constant 0 : i32
    return %arg0, %c0_i32 : i32, i32
  }
  func.func @transform_1(%arg0: i32) -> (i32, i32) {
    %c0_i32 = arith.constant 0 : i32
    %c0_i32_0 = arith.constant 0 : i32
    %c0_i32_1 = arith.constant 0 : i32
    return %c0_i32, %c0_i32_0 : i32, i32
  }
  func.func @transform_2(%arg0: i32) -> (i32, i32) {
    %c0_i32 = arith.constant 0 : i32
    %c0_i32_0 = arith.constant 0 : i32
    %c0_i32_1 = arith.constant 0 : i32
    return %c0_i32, %c0_i32_0 : i32, i32
  }
  func.func @transform_3(%arg0: i32) -> (i32, i32) {
    %c0_i32 = arith.constant 0 : i32
    %c0_i32_0 = arith.constant 0 : i32
    %c0_i32_1 = arith.constant 0 : i32
    return %c0_i32, %c0_i32_0 : i32, i32
  }
  func.func @transform_4(%arg0: i32) -> (i32, i32) {
    %c0_i32 = arith.constant 0 : i32
    %c0_i32_0 = arith.constant 0 : i32
    return %arg0, %c0_i32 : i32, i32
  }
}

</mosaic_0001>

<bundles_post_ra>
// kernel: tpu_custom_call.1
= control target key start
LH: loop header
LB: loop body
LE: loop exit
PB: predicated region body
PF: predicated region fallthrough
CT: control target
= control target key end

     0   :  { %9 = vsyncpa [#allocation3], 0  ;;  %s5488_s0 = inlined_call_operand.hbm [shape: f32[128,128], index: 0, kind: input, shape index: {}]   ;;  %s5489_s1 = inlined_call_operand.vmem [shape: f32[1,128], index: 1, kind: input, shape index: {}]   ;;  %s5490_s2 = inlined_call_operand.vmem [shape: f32[1,128], index: 2, kind: input, shape index: {}]   ;;  %s5491_s3 = inlined_call_operand.hbm [shape: f32[128,128], index: 3, kind: input, shape index: {}]   ;;  %s5492_s4 = inlined_call_operand.hbm [shape: f32[128,128], index: 4, kind: output, shape index: {}]  }
   0x1   :  { %10 = vsyncpa [#allocation6], 0 }
   0x2   :  { %11 = vsyncpa [#allocation4], 0  ;;  %s4019_s15 = smov [#allocation2]  }
   0x3   :  { %s17_s16 = sshll.u32 %s4019_s15, 4  ;;  %s18_s16 = int_to_ptr.vmem [resolvable:$true] %s17_s16 }
   0x4   :  { %s3961_s17 = scalar_lea.vmem %s18_s16, 2048  ;;  %p3966_p1 = scmp.lt.s32.totalorder %s18_s16, %s18_s16 }
   0x5   :  { %p3962_p0 = scmp.ne.s32.totalorder %s18_s16, %s3961_s17  ;;  %p3967_p2 = scmp.lt.s32.totalorder %s3961_s17, %s3961_s17 }
   0x7   :  { %p3968_p3 = por %p3967_p2, %p3966_p1 }
   0x9   :  { %p3969_p4 = pnand %p3968_p3, %p3962_p0 }
   0xb   :  { %3972 = shalt.err (!%p3969_p4)
}
   0xc   :  { %s4020_s18 = smov 128   ;;  %s4021_s19 = smov 8  }
   0xd   :  { %23 = dma.hbm_to_vmem [thread:$0]  %s5488_s0, 2048, %s18_s16, [#allocation3], %s4020_s18, %s4020_s18, %s4021_s19  }
   0xe   :  { %s4022_s22 = smov [#allocation5]  }
   0xf   :  { %s33_s23 = sshll.u32 %s4022_s22, 4  ;;  %s34_s23 = int_to_ptr.vmem [resolvable:$true] %s33_s23 }
  0x10   :  { %s3981_s24 = scalar_lea.vmem %s34_s23, 2048  ;;  %p3986_p6 = scmp.lt.s32.totalorder %s34_s23, %s34_s23 }
  0x11   :  { %p3982_p5 = scmp.ne.s32.totalorder %s34_s23, %s3981_s24  ;;  %p3987_p7 = scmp.lt.s32.totalorder %s3981_s24, %s3981_s24 }
  0x13   :  { %p3988_p8 = por %p3987_p7, %p3986_p6 }
  0x15   :  { %p3989_p9 = pnand %p3988_p8, %p3982_p5 }
  0x17   :  { %3992 = shalt.err (!%p3989_p9)
}
  0x18   :  { %39 = dma.hbm_to_vmem [thread:$0]  %s5491_s3, 2048, %s34_s23, [#allocation6], %s4020_s18, %s4020_s18, %s4021_s19  }
  0x19   :  { %4013 = dma.done.wait [#allocation3], 2048  }
  0x1a   :  { %4014 = vsyncadd [#allocation3], 4294965248 }
  0x1b   :  { %4015 = dma.done.wait [#allocation6], 2048  }
  0x1c   :  { %4016 = vsyncadd [#allocation6], 4294965248  ;;  %v77_v0 = vld [vmem:[#allocation5 + $0x78] sm:$0xff]  ;;  %v76_v1 = vld [vmem:[#allocation5 + $0x70] sm:$0xff] }
  0x1d   :  { %v75_v2 = vld [vmem:[#allocation5 + $0x68] sm:$0xff]  ;;  %v4061_v3 = vand.u32 4294901760, %v77_v0  ;;  %v4063_v4 = vand.u32 4294901760, %v76_v1  ;;  %v74_v6 = vld [vmem:[#allocation5 + $0x60] sm:$0xff]  ;;  %v73_v7 = vld [vmem:[#allocation5 + $0x58] sm:$0xff] }
  0x1e   :  { %v4065_v5 = vand.u32 4294901760, %v75_v2  ;;  %v72_v8 = vld [vmem:[#allocation5 + $0x50] sm:$0xff]  ;;  %v4067_v9 = vand.u32 4294901760, %v74_v6  ;;  %v4069_v10 = vand.u32 4294901760, %v73_v7  ;;  %v71_v12 = vld [vmem:[#allocation5 + $0x48] sm:$0xff]  ;;  %v70_v13 = vld [vmem:[#allocation5 + $0x40] sm:$0xff] }
  0x1f   :  { %5672 = vst [vmem:[#allocation11_spill] sm:$0xff] %v4061_v3  ;;  %5673 = vst [vmem:[#allocation12_spill] sm:$0xff] %v4063_v4  ;;  %v4071_v11 = vand.u32 4294901760, %v72_v8  ;;  %3228 = vmatprep.subr.mxu0 %v4061_v3  ;;  %v4075_v14 = vsub.f32 %v77_v0, %v4061_v3  ;;  %v4078_v15 = vsub.f32 %v76_v1, %v4063_v4  ;;  %v4080_v16 = vand.u32 4294901760, %v71_v12  ;;  %v69_v18 = vld [vmem:[#allocation5 + $0x38] sm:$0xff]  ;;  %v68_v25 = vld [vmem:[#allocation5 + $0x30] sm:$0xff] }
  0x20   :  { %5674 = vst [vmem:[#allocation13_spill] sm:$0xff] %v4065_v5  ;;  %5675 = vst [vmem:[#allocation14_spill] sm:$0xff] %v4067_v9  ;;  %v4083_v17 = vsub.f32 %v75_v2, %v4065_v5  ;;  %3229 = vmatpush3.msra.mxu0 %v4061_v3  ;;  %v4087_v19 = vsub.f32 %v74_v6, %v4067_v9  ;;  %v4090_v20 = vsub.f32 %v73_v7, %v4069_v10  ;;  %v67_v35 = vld [vmem:[#allocation5 + $0x28] sm:$0xff]  ;;  %v66_v40 = vld [vmem:[#allocation5 + $0x20] sm:$0xff] }
  0x21   :  { %5676 = vst [vmem:[#allocation15_spill] sm:$0xff] %v4069_v10  ;;  %5677 = vst [vmem:[#allocation16_spill] sm:$0xff] %v4071_v11  ;;  %3230 = vmatprep.subr.mxu0 %v4063_v4  ;;  %v4094_v21 = vand.u32 4294901760, %v4075_v14  ;;  %v4097_v22 = vand.u32 4294901760, %v4078_v15  ;;  %v4102_v24 = vand.u32 4294901760, %v70_v13  ;;  %v4108_v27 = vand.u32 4294901760, %v69_v18 }
  0x22   :  { %5678 = vst [vmem:[#allocation17_spill] sm:$0xff] %v4075_v14  ;;  %5679 = vst [vmem:[#allocation18_spill] sm:$0xff] %v4078_v15  ;;  %v4100_v23 = vand.u32 4294901760, %v4083_v17  ;;  %3231 = vmatpush3.msra.mxu0 %v4063_v4  ;;  %v4106_v26 = vand.u32 4294901760, %v4087_v19  ;;  %v4111_v28 = vand.u32 4294901760, %v4090_v20  ;;  %v4114_v29 = vsub.f32 %v72_v8, %v4071_v11  ;;  %v46_v47 = vld [vmem:[#allocation2] sm:$0xff] }
  0x23   :  { %5680 = vst [vmem:[#allocation19_spill] sm:$0xff] %v4080_v16  ;;  %5681 = vst [vmem:[#allocation20_spill] sm:$0xff] %v4083_v17  ;;  %3232 = vmatprep.subr.mxu0 %v4065_v5  ;;  %v323_v30 = vsub.f32 %v4075_v14, %v4094_v21  ;;  %v330_v31 = vsub.f32 %v4078_v15, %v4097_v22  ;;  %v4124_v33 = vsub.f32 %v71_v12, %v4080_v16  ;;  %v47_v49 = vld [vmem:[#allocation2 + $0x8] sm:$0xff]  ;;  %v65_v53 = vld [vmem:[#allocation5 + $0x18] sm:$0xff] }
  0x24   :  { %5682 = vst [vmem:[#allocation21_spill] sm:$0xff] %v4087_v19  ;;  %5683 = vst [vmem:[#allocation22_spill] sm:$0xff] %v4090_v20  ;;  %v337_v32 = vsub.f32 %v4083_v17, %v4100_v23  ;;  %3233 = vmatpush3.msra.mxu0 %v4065_v5  ;;  %v4127_v34 = vand.u32 4294901760, %v68_v25  ;;  %v344_v38 = vsub.f32 %v4087_v19, %v4106_v26  ;;  %v4137_v39 = vand.u32 4294901760, %v4114_v29  ;;  %v64_v59 = vld [vmem:[#allocation5 + $0x10] sm:$0xff]  ;;  %v63_v6 = vld [vmem:[#allocation5 + $0x8] sm:$0xff] }
  0x25   :  { %5684 = vst [vmem:[#allocation23_spill] sm:$0xff] %v4094_v21  ;;  %5685 = vst [vmem:[#allocation24_spill] sm:$0xff] %v4097_v22  ;;  %3234 = vmatprep.subr.mxu0 %v4067_v9  ;;  %v4130_v36 = vand.u32 4294901760, %v323_v30  ;;  %v4132_v37 = vand.u32 4294901760, %v330_v31  ;;  %v4141_v41 = vand.u32 4294901760, %v4124_v33  ;;  %v4144_v42 = vsub.f32 %v70_v13, %v4102_v24  ;;  %v48_v63 = vld [vmem:[#allocation2 + $0x10] sm:$0xff] }
  0x26   :  { %5686 = vst [vmem:[#allocation25_spill] sm:$0xff] %v4100_v23  ;;  %5687 = vst [vmem:[#allocation26_spill] sm:$0xff] %v4102_v24  ;;  %3235 = vmatpush3.msra.mxu0 %v4067_v9  ;;  %v4148_v43 = vand.u32 4294901760, %v337_v32  ;;  %v351_v44 = vsub.f32 %v4090_v20, %v4111_v28  ;;  %v4152_v45 = vand.u32 4294901760, %v67_v35  ;;  %v4155_v46 = vsub.f32 %v69_v18, %v4108_v27  ;;  %v49_v18 = vld [vmem:[#allocation2 + $0x18] sm:$0xff]  ;;  %v62_v31 = vld [vmem:[#allocation5] sm:$0xff] }
  0x27   :  { %5688 = vst [vmem:[#allocation27_spill] sm:$0xff] %v4106_v26  ;;  %5689 = vst [vmem:[#allocation28_spill] sm:$0xff] %v4108_v27  ;;  %3236 = vmatprep.subr.mxu0 %v4069_v10  ;;  %3284 = vmatprep.subr.mxu1 %v4130_v36  ;;  %v4159_v48 = vand.u32 4294901760, %v66_v40  ;;  %v4163_v50 = vand.u32 4294901760, %v344_v38  ;;  %v358_v51 = vsub.f32 %v4114_v29, %v4137_v39  ;;  %v4168_v52 = vand.u32 4294901760, %v4144_v42  ;;  %v55_v22 = vld [vmem:[#allocation2 + $0x48] sm:$0xff] }
  0x28   :  { %5690 = vst [vmem:[#allocation29_spill] sm:$0xff] %v4111_v28  ;;  %5691 = vst [vmem:[#allocation30_spill] sm:$0xff] %v4114_v29  ;;  %3237 = vmatpush3.msra.mxu0 %v4069_v10  ;;  %3285 = vmatpush3.msra.mxu1 %v4130_v36  ;;  %v4171_v54 = vsub.f32 %v68_v25, %v4127_v34  ;;  %v365_v55 = vsub.f32 %v4124_v33, %v4141_v41  ;;  %v4177_v56 = vand.u32 4294901760, %v46_v47 }
  0x29   :  { %5692 = vst [vmem:[#allocation31_spill] sm:$0xff] %v4124_v33  ;;  %5693 = vst [vmem:[#allocation32_spill] sm:$0xff] %v4127_v34  ;;  %3238 = vmatprep.subr.mxu0 %v4071_v11  ;;  %3286 = vmatprep.subr.mxu1 %v4132_v37  ;;  %v4181_v57 = vand.u32 4294901760, %v351_v44  ;;  %v4184_v58 = vand.u32 4294901760, %v4155_v46  ;;  %v4187_v60 = vsub.f32 %v67_v35, %v4152_v45  ;;  %v4189_v61 = vand.u32 4294901760, %v47_v49 }
  0x2a   :  { %5694 = vst [vmem:[#allocation33_spill] sm:$0xff] %v4130_v36  ;;  %5695 = vst [vmem:[#allocation34_spill] sm:$0xff] %v4132_v37  ;;  %3239 = vmatpush3.msra.mxu0 %v4071_v11  ;;  %3287 = vmatpush3.msra.mxu1 %v4132_v37  ;;  %v4193_v62 = vand.u32 4294901760, %v65_v53  ;;  %v4197_v0 = vand.u32 4294901760, %v358_v51  ;;  %v372_v1 = vsub.f32 %v4144_v42, %v4168_v52  ;;  %v4202_v2 = vand.u32 4294901760, %v4171_v54  ;;  %v51_v36 = vld [vmem:[#allocation2 + $0x28] sm:$0xff] }
  0x2b   :  { %5696 = vst [vmem:[#allocation35_spill] sm:$0xff] %v4137_v39  ;;  %5697 = vst [vmem:[#allocation36_spill] sm:$0xff] %v4141_v41  ;;  %3240 = vmatprep.subr.mxu0 %v4080_v16  ;;  %3288 = vmatprep.subr.mxu1 %v4148_v43  ;;  %v4205_v7 = vsub.f32 %v66_v40, %v4159_v48  ;;  %v4209_v8 = vand.u32 4294901760, %v365_v55  ;;  %v4211_v12 = vand.u32 4294901760, %v64_v59  ;;  %v4221_v30 = vand.u32 4294901760, %v4187_v60  ;;  %v50_v55 = vld [vmem:[#allocation2 + $0x20] sm:$0xff] }
  0x2c   :  { %5698 = vst [vmem:[#allocation37_spill] sm:$0xff] %v4144_v42  ;;  %5699 = vst [vmem:[#allocation38_spill] sm:$0xff] %v4148_v43  ;;  %3241 = vmatpush3.msra.mxu0 %v4080_v16  ;;  %3289 = vmatpush3.msra.mxu1 %v4148_v43  ;;  %v4214_v13 = vsub.f32 %v46_v47, %v4177_v56  ;;  %v379_v25 = vsub.f32 %v4155_v46, %v4184_v58  ;;  %v4226_v35 = vand.u32 4294901760, %v48_v63 }
  0x2d   :  { %5700 = vst [vmem:[#allocation39_spill] sm:$0xff] %v4152_v45  ;;  %5701 = vst [vmem:[#allocation40_spill] sm:$0xff] %v4155_v46  ;;  %3242 = vmatprep.subr.mxu0 %v4102_v24  ;;  %3290 = vmatprep.subr.mxu1 %v4163_v50  ;;  %v4224_v32 = vsub.f32 %v47_v49, %v4189_v61  ;;  %v4230_v38 = vand.u32 4294901760, %v63_v6  ;;  %v4233_v40 = vsub.f32 %v65_v53, %v4193_v62 }
  0x2e   :  { %5702 = vst [vmem:[#allocation41_spill] sm:$0xff] %v4159_v48  ;;  %5703 = vst [vmem:[#allocation42_spill] sm:$0xff] %v4163_v50  ;;  %3243 = vmatpush3.msra.mxu0 %v4102_v24  ;;  %3291 = vmatpush3.msra.mxu1 %v4163_v50  ;;  %v4237_v44 = vand.u32 4294901760, %v372_v1  ;;  %v386_v47 = vsub.f32 %v4171_v54, %v4202_v2  ;;  %v4242_v49 = vand.u32 4294901760, %v4205_v7  ;;  %v4244_v51 = vand.u32 4294901760, %v49_v18 }
  0x2f   :  { %5704 = vst [vmem:[#allocation43_spill] sm:$0xff] %v4168_v52  ;;  %5705 = vst [vmem:[#allocation44_spill] sm:$0xff] %v4171_v54  ;;  %3244 = vmatprep.subr.mxu0 %v4108_v27  ;;  %3292 = vmatprep.subr.mxu1 %v4181_v57  ;;  %v4248_v53 = vand.u32 4294901760, %v62_v31  ;;  %v4252_v1 = vsub.f32 %v64_v59, %v4211_v12  ;;  %v4256_v50 = vand.u32 4294901760, %v379_v25  ;;  %v4267_v59 = vand.u32 4294901760, %v4233_v40 }
  0x30   :  { %5706 = vst [vmem:[#allocation45_spill] sm:$0xff] %v4181_v57  ;;  %5707 = vst [vmem:[#allocation46_spill] sm:$0xff] %v4184_v58  ;;  %3245 = vmatpush3.msra.mxu0 %v4108_v27  ;;  %3293 = vmatpush3.msra.mxu1 %v4181_v57  ;;  %v393_v43 = vsub.f32 %v4187_v60, %v4221_v30  ;;  %v4270_v57 = vsub.f32 %v63_v6, %v4230_v38  ;;  %v4272_v25 = vand.u32 4294901760, %v50_v55 }
  0x31   :  { %5708 = vst [vmem:[#allocation47_spill] sm:$0xff] %v4187_v60  ;;  %5709 = vst [vmem:[#allocation48_spill] sm:$0xff] %v4193_v62  ;;  %3246 = vmatprep.subr.mxu0 %v4127_v34  ;;  %3294 = vmatprep.subr.mxu1 %v4197_v0  ;;  %v4276_v37 = vand.u32 4294901760, %v386_v47  ;;  %v5727_v6 = vand.u32 4294901760, %v4214_v13  ;;  %v4291_v58 = vand.u32 4294901760, %v51_v36  ;;  %v4302_v52 = vsub.f32 %v62_v31, %v4248_v53 }
  0x32   :  { %5710 = vst [vmem:[#allocation49_spill] sm:$0xff] %v4197_v0  ;;  %5711 = vst [vmem:[#allocation50_spill] sm:$0xff] %v4202_v2  ;;  %3247 = vmatpush3.msra.mxu0 %v4127_v34  ;;  %3295 = vmatpush3.msra.mxu1 %v4197_v0  ;;  %v4262_v0 = vsub.f32 %v48_v63, %v4226_v35  ;;  %v400_v63 = vsub.f32 %v4205_v7, %v4242_v49  ;;  %v4289_v2 = vand.u32 4294901760, %v4252_v1 }
  0x33   :  { %5712 = vst [vmem:[#allocation51_spill] sm:$0xff] %v4205_v7  ;;  %5713 = vst [vmem:[#allocation52_spill] sm:$0xff] %v4209_v8  ;;  %3248 = vmatprep.subr.mxu0 %v4152_v45  ;;  %3296 = vmatprep.subr.mxu1 %v4209_v8  ;;  %v4295_v47 = vand.u32 4294901760, %v393_v43  ;;  %v407_v41 = vsub.f32 %v4233_v40, %v4267_v59  ;;  %v4309_v43 = vand.u32 4294901760, %v4270_v57 }
  0x34   :  { %5714 = vst [vmem:[#allocation53_spill] sm:$0xff] %v4211_v12  ;;  %5715 = vst [vmem:[#allocation54_spill] sm:$0xff] %v4221_v30  ;;  %3249 = vmatpush3.msra.mxu0 %v4152_v45  ;;  %3297 = vmatpush3.msra.mxu1 %v4209_v8  ;;  %v4281_v30 = vsub.f32 %v49_v18, %v4244_v51  ;;  %v162_v8 = vsub.f32 %v4214_v13, %v5727_v6  ;;  %v5730_v18 = vand.u32 4294901760, %v4224_v32  ;;  %v52_v6 = vld [vmem:[#allocation2 + $0x30] sm:$0xff] }
  0x35   :  { %5716 = vst [vmem:[#allocation55_spill] sm:$0xff] %v4230_v38  ;;  %5717 = vst [vmem:[#allocation56_spill] sm:$0xff] %v4233_v40  ;;  %3250 = vmatprep.subr.mxu0 %v4159_v48  ;;  %3298 = vmatprep.subr.mxu1 %v4237_v44  ;;  %v4312_v39 = vsub.f32 %v50_v55, %v4272_v25  ;;  %v4316_v31 = vand.u32 4294901760, %v400_v63  ;;  %v4324_v55 = vsub.f32 %v51_v36, %v4291_v58 }
  0x36   :  { %5718 = vst [vmem:[#allocation57_spill] sm:$0xff] %v4237_v44  ;;  %5719 = vst [vmem:[#allocation58_spill] sm:$0xff] %v4242_v49  ;;  %3251 = vmatpush3.msra.mxu0 %v4159_v48  ;;  %3299 = vmatpush3.msra.mxu1 %v4237_v44  ;;  %v172_v49 = vsub.f32 %v4224_v32, %v5730_v18  ;;  %v53_v44 = vld [vmem:[#allocation2 + $0x38] sm:$0xff]  ;;  %v4326_v28 = vand.u32 4294901760, %v52_v6  ;;  %v5734_v18 = vand.u32 4294901760, %v4262_v0  ;;  %v4338_v36 = vand.u32 4294901760, %v407_v41 }
  0x37   :  { %5720 = vst [vmem:[#allocation59_spill] sm:$0xff] %v4248_v53  ;;  %5721 = vst [vmem:[#allocation60_spill] sm:$0xff] %v4252_v1  ;;  %3252 = vmatprep.subr.mxu0 %v4193_v62  ;;  %3300 = vmatprep.subr.mxu1 %v4256_v50  ;;  %v4343_v23 = vand.u32 4294901760, %v53_v44 }
  0x38   :  { %5722 = vst [vmem:[#allocation61_spill] sm:$0xff] %v4256_v50  ;;  %5723 = vst [vmem:[#allocation62_spill] sm:$0xff] %v4262_v0  ;;  %3253 = vmatpush3.msra.mxu0 %v4193_v62  ;;  %3301 = vmatpush3.msra.mxu1 %v4256_v50  ;;  %v163_v50 = vand.u32 4294901760, %v162_v8  ;;  %v173_v63 = vand.u32 4294901760, %v172_v49  ;;  %v182_v26 = vsub.f32 %v4262_v0, %v5734_v18  ;;  %v5737_v49 = vand.u32 4294901760, %v4281_v30 }
  0x39   :  { %5724 = vst [vmem:[#allocation63_spill] sm:$0xff] %v4267_v59  ;;  %5725 = vst [vmem:[#allocation64_spill] sm:$0xff] %v4270_v57  ;;  %3254 = vmatprep.subr.mxu0 %v4211_v12  ;;  %3302 = vmatprep.subr.mxu1 %v4276_v37  ;;  %v414_v59 = vsub.f32 %v4252_v1, %v4289_v2  ;;  %v421_v8 = vsub.f32 %v4270_v57, %v4309_v43 }
  0x3a   :  { %5726 = vst [vmem:[#allocation65_spill] sm:$0xff] %v4276_v37  ;;  %5728 = vst [vmem:[#allocation66_spill] sm:$0xff] %v4289_v2  ;;  %3255 = vmatpush3.msra.mxu0 %v4211_v12  ;;  %3303 = vmatpush3.msra.mxu1 %v4276_v37  ;;  %v4334_v37 = vand.u32 4294901760, %v4302_v52  ;;  %v192_v18 = vsub.f32 %v4281_v30, %v5737_v49  ;;  %v4355_v2 = vsub.f32 %v52_v6, %v4326_v28 }
  0x3b   :  { %5729 = vst [vmem:[#allocation67_spill] sm:$0xff] %v4295_v47  ;;  %5731 = vst [vmem:[#allocation68_spill] sm:$0xff] %v4302_v52  ;;  %3256 = vmatprep.subr.mxu0 %v4230_v38  ;;  %3304 = vmatprep.subr.mxu1 %v4295_v47  ;;  %v4351_v41 = vand.u32 4294901760, %v414_v59  ;;  %v5740_v59 = vand.u32 4294901760, %v4312_v39  ;;  %v4368_v6 = vsub.f32 %v53_v44, %v4343_v23 }
  0x3c   :  { %5732 = vst [vmem:[#allocation69_spill] sm:$0xff] %v4309_v43  ;;  %5733 = vst [vmem:[#allocation70_spill] sm:$0xff] %v4316_v31  ;;  %3257 = vmatpush3.msra.mxu0 %v4230_v38  ;;  %3305 = vmatpush3.msra.mxu1 %v4295_v47  ;;  %v54_v38 = vld [vmem:[#allocation2 + $0x40] sm:$0xff]  ;;  %v183_v43 = vand.u32 4294901760, %v182_v26  ;;  %v428_v0 = vsub.f32 %v4302_v52, %v4334_v37  ;;  %v193_v26 = vand.u32 4294901760, %v192_v18 }
  0x3d   :  { %5735 = vst [vmem:[#allocation71_spill] sm:$0xff] %v4334_v37  ;;  %5736 = vst [vmem:[#allocation72_spill] sm:$0xff] %v4338_v36  ;;  %3258 = vmatprep.subr.mxu0 %v4248_v53  ;;  %3306 = vmatprep.subr.mxu1 %v4316_v31  ;;  %v202_v49 = vsub.f32 %v4312_v39, %v5740_v59  ;;  %v4370_v47 = vand.u32 4294901760, %v54_v38  ;;  %v5557_v59 = vand.u32 4294901760, %v4355_v2 }
  0x3e   :  { %3259 = vmatpush3.msra.mxu0 %v4248_v53  ;;  %3260 = vmatprep.mubr.f32.mxu0 %v163_v50  ;;  %5738 = vst [vmem:[#allocation73_spill] sm:$0xff] %v4351_v41  ;;  %v4362_v50 = vand.u32 4294901760, %v421_v8  ;;  %v4383_v44 = vand.u32 4294901760, %v428_v0 }
  0x3f   :  { %3307 = vmatpush3.msra.mxu1 %v4316_v31  ;;  %3261 = vmatmul.mubr.f32.vlgmr.msra.gmra.mxu0 %v173_v63  ;;  %v5741_v63 = vand.u32 4294901760, %v4324_v55  ;;  %v4380_v31 = vand.u32 4294901760, %v55_v22  ;;  %v203_v18 = vand.u32 4294901760, %v202_v49  ;;  %v4389_v37 = vsub.f32 %v54_v38, %v4370_v47 }
  0x40   :  { %3308 = vmatprep.subr.mxu1 %v4338_v36  ;;  %3340 = vmatprep.subr.mxu0 %v4075_v14  ;;  %5739 = vst [vmem:[#allocation74_spill] sm:$0xff] %v4362_v50  ;;  %5742 = vst [vmem:[#allocation75_spill] sm:$0xff] %v4383_v44  ;;  %v5743_v38 = vand.u32 4294901760, %v4368_v6 }
  0x41   :  { %3309 = vmatpush3.msra.mxu1 %v4338_v36  ;;  %3341 = vmatpush3.msra.mxu0 %v4075_v14  ;;  %v212_v8 = vsub.f32 %v4324_v55, %v5741_v63  ;;  %v56_v36 = vld [vmem:[#allocation2 + $0x50] sm:$0xff]  ;;  %v57_v63 = vld [vmem:[#allocation2 + $0x58] sm:$0xff]  ;;  %v4398_v49 = vsub.f32 %v55_v22, %v4380_v31  ;;  %v58_v22 = vld [vmem:[#allocation2 + $0x60] sm:$0xff] }
  0x42   :  { %3310 = vmatprep.subr.mxu1 %v4351_v41  ;;  %3342 = vmatprep.subr.mxu0 %v4078_v15  ;;  %v4400_v14 = vand.u32 4294901760, %v56_v36 }
  0x43   :  { %3263 = vmatprep.mubr.f32.mxu0 %v183_v43  ;;  %3311 = vmatpush3.msra.mxu1 %v4351_v41  ;;  %v213_v0 = vand.u32 4294901760, %v212_v8  ;;  %v222_v43 = vsub.f32 %v4355_v2, %v5557_v59 }
  0x44   :  { %3343 = vmatpush3.msra.mxu0 %v4078_v15  ;;  %3312 = vmatprep.subr.mxu1 %v4362_v50  ;;  %v4416_v15 = vsub.f32 %v56_v36, %v4400_v14  ;;  %v5745_v36 = vand.u32 4294901760, %v4398_v49 }
  0x45   :  { %3264 = vmatmul.mubr.f32.gmra.mxu0 %v193_v26  ;;  %3344 = vmatprep.subr.mxu0 %v4083_v17  ;;  %v232_v26 = vsub.f32 %v4368_v6, %v5743_v38  ;;  %v223_v59 = vand.u32 4294901760, %v222_v43  ;;  %v59_v38 = vld [vmem:[#allocation2 + $0x68] sm:$0xff] }
  0x46   :  { %3313 = vmatpush3.msra.mxu1 %v4362_v50  ;;  %3345 = vmatpush3.msra.mxu0 %v4083_v17  ;;  %v4409_v17 = vand.u32 4294901760, %v57_v63 }
  0x47   :  { %3314 = vmatprep.subr.mxu1 %v4383_v44  ;;  %3346 = vmatprep.subr.mxu0 %v4087_v19  ;;  %v233_v8 = vand.u32 4294901760, %v232_v26  ;;  %v252_v26 = vsub.f32 %v4398_v49, %v5745_v36  ;;  %v61_v36 = vld [vmem:[#allocation2 + $0x78] sm:$0xff] }
  0x48   :  { %3266 = vmatprep.mubr.f32.mxu0 %v203_v18  ;;  %3315 = vmatpush3.msra.mxu1 %v4383_v44  ;;  %v4426_v43 = vsub.f32 %v57_v63, %v4409_v17  ;;  %v4428_v18 = vand.u32 4294901760, %v58_v22  ;;  %v4437_v44 = vand.u32 4294901760, %v59_v38  ;;  %v60_v63 = vld [vmem:[#allocation2 + $0x70] sm:$0xff]  ;;  %v4465_v41 = vand.u32 4294901760, %v61_v36 }
  0x49   :  { %3316 = vmatprep.mubr.f32.mxu1 %v4177_v56  ;;  %3347 = vmatpush3.msra.mxu0 %v4087_v19 }
  0x4a   :  { %3267 = vmatmul.mubr.f32.gmra.mxu0 %v213_v0  ;;  %3317 = vmatmul.mubr.f32.vlgmr.msra.gmra.mxu1 %v4189_v61  ;;  %v5744_v0 = vand.u32 4294901760, %v4389_v37  ;;  %v4444_v50 = vsub.f32 %v58_v22, %v4428_v18  ;;  %v5747_v22 = vand.u32 4294901760, %v4426_v43 }
  0x4b   :  { %3348 = vmatprep.subr.mxu0 %v4090_v20  ;;  %3396 = vmatprep.subr.mxu1 %v4061_v3 }
  0x4c   :  { %3349 = vmatpush3.msra.mxu0 %v4090_v20  ;;  %3397 = vmatpush3.msra.mxu1 %v4061_v3  ;;  %v242_v19 = vsub.f32 %v4389_v37, %v5744_v0  ;;  %v253_v20 = vand.u32 4294901760, %v252_v26  ;;  %v272_v26 = vsub.f32 %v4426_v43, %v5747_v22 }
  0x4d   :  { %3350 = vmatprep.subr.mxu0 %v4114_v29  ;;  %3398 = vmatprep.subr.mxu1 %v4063_v4 }
  0x4e   :  { %3269 = vmatprep.mubr.f32.mxu0 %v223_v59  ;;  %3319 = vmatprep.mubr.f32.mxu1 %v4226_v35  ;;  %v243_v0 = vand.u32 4294901760, %v242_v19  ;;  %v4454_v19 = vsub.f32 %v59_v38, %v4437_v44  ;;  %v4456_v59 = vand.u32 4294901760, %v60_v63  ;;  %v273_v22 = vand.u32 4294901760, %v272_v26 }
  0x4f   :  { %3351 = vmatpush3.msra.mxu0 %v4114_v29  ;;  %3399 = vmatpush3.msra.mxu1 %v4063_v4 }
  0x50   :  { %3270 = vmatmul.mubr.f32.gmra.mxu0 %v233_v8  ;;  %3320 = vmatmul.mubr.f32.gmra.mxu1 %v4244_v51  ;;  %v5746_v8 = vand.u32 4294901760, %v4416_v15 }
  0x51   :  { %3352 = vmatprep.subr.mxu0 %v4124_v33  ;;  %3400 = vmatprep.subr.mxu1 %v4065_v5 }
  0x52   :  { %3353 = vmatpush3.msra.mxu0 %v4124_v33  ;;  %3401 = vmatpush3.msra.mxu1 %v4065_v5  ;;  %v262_v29 = vsub.f32 %v4416_v15, %v5746_v8  ;;  %v5574_v33 = vand.u32 4294901760, %v4444_v50  ;;  %v4472_v8 = vsub.f32 %v60_v63, %v4456_v59 }
  0x53   :  { %3354 = vmatprep.subr.mxu0 %v4144_v42  ;;  %3402 = vmatprep.subr.mxu1 %v4067_v9 }
  0x54   :  { %3272 = vmatprep.mubr.f32.mxu0 %v243_v0  ;;  %3322 = vmatprep.mubr.f32.mxu1 %v4272_v25  ;;  %v263_v38 = vand.u32 4294901760, %v262_v29  ;;  %v5575_v0 = vand.u32 4294901760, %v4454_v19  ;;  %v4482_v29 = vsub.f32 %v61_v36, %v4465_v41  ;;  %v5577_v26 = vand.u32 4294901760, %v4472_v8 }
  0x55   :  { %3355 = vmatpush3.msra.mxu0 %v4144_v42  ;;  %3403 = vmatpush3.msra.mxu1 %v4067_v9 }
  0x56   :  { %3273 = vmatmul.mubr.f32.gmra.mxu0 %v253_v20  ;;  %3323 = vmatmul.mubr.f32.gmra.mxu1 %v4291_v58  ;;  %v282_v20 = vsub.f32 %v4444_v50, %v5574_v33  ;;  %v292_v63 = vsub.f32 %v4454_v19, %v5575_v0  ;;  %v5576_v33 = vand.u32 4294901760, %v4482_v29  ;;  %v302_v0 = vsub.f32 %v4472_v8, %v5577_v26  ;;  %v5755_v26 = vld [vmem:[#allocation29_spill] sm:$0xff] }
  0x57   :  { %3356 = vmatprep.subr.mxu0 %v4155_v46  ;;  %3404 = vmatprep.subr.mxu1 %v4069_v10 }
  0x58   :  { %3357 = vmatpush3.msra.mxu0 %v4155_v46  ;;  %3405 = vmatpush3.msra.mxu1 %v4069_v10  ;;  %v283_v36 = vand.u32 4294901760, %v282_v20  ;;  %v303_v20 = vand.u32 4294901760, %v302_v0  ;;  %v5748_v0 = vld [vmem:[#allocation24_spill] sm:$0xff] }
  0x59   :  { %3358 = vmatprep.subr.mxu0 %v4171_v54  ;;  %3406 = vmatprep.subr.mxu1 %v4071_v11 }
  0x5a   :  { %3275 = vmatprep.mubr.f32.mxu0 %v263_v38  ;;  %3325 = vmatprep.mubr.f32.mxu1 %v4326_v28  ;;  %v293_v38 = vand.u32 4294901760, %v292_v63 }
  0x5b   :  { %3359 = vmatpush3.msra.mxu0 %v4171_v54  ;;  %3407 = vmatpush3.msra.mxu1 %v4071_v11 }
  0x5c   :  { %3276 = vmatmul.mubr.f32.gmra.mxu0 %v273_v22  ;;  %3326 = vmatmul.mubr.f32.gmra.mxu1 %v4343_v23  ;;  %v312_v22 = vsub.f32 %v4482_v29, %v5576_v33  ;;  %v5754_v33 = vand.u32 4294901760, %v4224_v32 }
  0x5d   :  { %3360 = vmatprep.subr.mxu0 %v4187_v60  ;;  %3408 = vmatprep.subr.mxu1 %v4080_v16 }
  0x5e   :  { %3361 = vmatpush3.msra.mxu0 %v4187_v60  ;;  %3409 = vmatpush3.msra.mxu1 %v4080_v16  ;;  %v313_v63 = vand.u32 4294901760, %v312_v22  ;;  %v5751_v22 = vld [vmem:[#allocation25_spill] sm:$0xff] }
  0x5f   :  { %3362 = vmatprep.subr.mxu0 %v4205_v7  ;;  %3410 = vmatprep.subr.mxu1 %v4102_v24 }
  0x60   :  { %3278 = vmatprep.mubr.f32.mxu0 %v283_v36  ;;  %3328 = vmatprep.mubr.f32.mxu1 %v4370_v47  ;;  %v5749_v36 = vld [vmem:[#allocation62_spill] sm:$0xff] }
  0x61   :  { %3363 = vmatpush3.msra.mxu0 %v4205_v7  ;;  %3411 = vmatpush3.msra.mxu1 %v4102_v24 }
  0x62   :  { %3279 = vmatmul.mubr.f32.gmra.mxu0 %v293_v38  ;;  %3329 = vmatmul.mubr.f32.gmra.mxu1 %v4380_v31  ;;  %v5750_v38 = vld [vmem:[#allocation55_spill] sm:$0xff] }
  0x63   :  { %3364 = vmatprep.subr.mxu0 %v4233_v40  ;;  %3412 = vmatprep.subr.mxu1 %v4108_v27 }
  0x64   :  { %3365 = vmatpush3.msra.mxu0 %v4233_v40  ;;  %3413 = vmatpush3.msra.mxu1 %v4108_v27 }
  0x65   :  { %3366 = vmatprep.subr.mxu0 %v4252_v1  ;;  %3414 = vmatprep.subr.mxu1 %v4127_v34 }
  0x66   :  { %3281 = vmatprep.mubr.f32.mxu0 %v303_v20  ;;  %3331 = vmatprep.mubr.f32.mxu1 %v4400_v14  ;;  %v5752_v20 = vld [vmem:[#allocation27_spill] sm:$0xff] }
  0x67   :  { %3367 = vmatpush3.msra.mxu0 %v4252_v1  ;;  %3415 = vmatpush3.msra.mxu1 %v4127_v34 }
  0x68   :  { %3282 = vmatmul.mubr.f32.gmra.mxu0 %v313_v63  ;;  %3332 = vmatmul.mubr.f32.gmra.mxu1 %v4409_v17  ;;  %v5753_v63 = vand.u32 4294901760, %v4214_v13 }
  0x69   :  { %3368 = vmatprep.subr.mxu0 %v4270_v57  ;;  %3416 = vmatprep.subr.mxu1 %v4152_v45 }
  0x6a   :  { %3369 = vmatpush3.msra.mxu0 %v4270_v57  ;;  %3417 = vmatpush3.msra.mxu1 %v4152_v45 }
  0x6b   :  { %3370 = vmatprep.subr.mxu0 %v4302_v52  ;;  %3418 = vmatprep.subr.mxu1 %v4159_v48 }
  0x6c   :  { %3334 = vmatprep.mubr.f32.mxu1 %v4428_v18  ;;  %3371 = vmatpush3.msra.mxu0 %v4302_v52 }
  0x6d   :  { %3372 = vmatprep.mubr.f32.mxu0 %v4214_v13  ;;  %3419 = vmatpush3.msra.mxu1 %v4159_v48  ;;  %v5757_v13 = vand.u32 4294901760, %v5749_v36 }
  0x6e   :  { %3335 = vmatmul.mubr.f32.gmra.mxu1 %v4437_v44  ;;  %3373 = vmatmul.mubr.f32.vlgmr.msra.gmra.mxu0 %v4224_v32  ;;  %v5759_v32 = vld [vmem:[#allocation36_spill] sm:$0xff] }
  0x6f   :  { %3420 = vmatprep.subr.mxu1 %v4193_v62  ;;  %3452 = vmatprep.subr.mxu0 %v4094_v21 }
  0x70   :  { %3421 = vmatpush3.msra.mxu1 %v4193_v62  ;;  %3453 = vmatpush3.msra.mxu0 %v4094_v21 }
  0x71   :  { %3422 = vmatprep.subr.mxu1 %v4211_v12  ;;  %3454 = vmatprep.subr.mxu0 %v5748_v0 }
  0x72   :  { %3337 = vmatprep.mubr.f32.mxu1 %v4456_v59  ;;  %3375 = vmatprep.mubr.f32.mxu0 %v5749_v36  ;;  %v5761_v36 = vand.u32 4294901760, %v4312_v39 }
  0x73   :  { %3423 = vmatpush3.msra.mxu1 %v4211_v12  ;;  %3455 = vmatpush3.msra.mxu0 %v5748_v0 }
  0x74   :  { %3338 = vmatmul.mubr.f32.gmra.mxu1 %v4465_v41  ;;  %3376 = vmatmul.mubr.f32.gmra.mxu0 %v4281_v30 }
  0x75   :  { %3424 = vmatprep.subr.mxu1 %v5750_v38  ;;  %3456 = vmatprep.subr.mxu0 %v5751_v22 }
  0x76   :  { %3425 = vmatpush3.msra.mxu1 %v5750_v38  ;;  %3457 = vmatpush3.msra.mxu0 %v5751_v22  ;;  %v5756_v22 = vld [vmem:[#allocation35_spill] sm:$0xff] }
  0x77   :  { %3426 = vmatprep.subr.mxu1 %v4248_v53  ;;  %3458 = vmatprep.subr.mxu0 %v5752_v20 }
  0x78   :  { %3378 = vmatprep.mubr.f32.mxu0 %v4312_v39  ;;  %3427 = vmatpush3.msra.mxu1 %v4248_v53  ;;  %v5765_v39 = vand.u32 4294901760, %v4355_v2 }
  0x79   :  { %3428 = vmatprep.mubr.f32.mxu1 %v5753_v63  ;;  %3459 = vmatpush3.msra.mxu0 %v5752_v20  ;;  %v5760_v63 = vld [vmem:[#allocation43_spill] sm:$0xff] }
  0x7a   :  { %3379 = vmatmul.mubr.f32.gmra.mxu0 %v4324_v55  ;;  %3429 = vmatmul.mubr.f32.vlgmr.msra.gmra.mxu1 %v5754_v33  ;;  %v5758_v33 = vand.u32 4294901760, %v4281_v30  ;;  %v5762_v30 = vand.u32 4294901760, %v4324_v55  ;;  %v5766_v55 = vand.u32 4294901760, %v4368_v6 }
  0x7b   :  { %3460 = vmatprep.subr.mxu0 %v5755_v26  ;;  %3508 = vmatprep.subr.mxu1 %v4061_v3 }
  0x7c   :  { %3461 = vmatpush3.msra.mxu0 %v5755_v26  ;;  %3509 = vmatpush3.msra.mxu1 %v4061_v3 }
  0x7d   :  { %3462 = vmatprep.subr.mxu0 %v5756_v22  ;;  %3510 = vmatprep.subr.mxu1 %v4063_v4 }
  0x7e   :  { %3381 = vmatprep.mubr.f32.mxu0 %v4355_v2  ;;  %3431 = vmatprep.mubr.f32.mxu1 %v5757_v13  ;;  %v5763_v13 = vld [vmem:[#allocation46_spill] sm:$0xff]  ;;  %v5769_v2 = vand.u32 4294901760, %v4389_v37 }
  0x7f   :  { %3463 = vmatpush3.msra.mxu0 %v5756_v22  ;;  %3511 = vmatpush3.msra.mxu1 %v4063_v4 }
  0x80   :  { %3382 = vmatmul.mubr.f32.gmra.mxu0 %v4368_v6  ;;  %3432 = vmatmul.mubr.f32.gmra.mxu1 %v5758_v33  ;;  %v5764_v33 = vld [vmem:[#allocation50_spill] sm:$0xff]  ;;  %v5770_v6 = vand.u32 4294901760, %v4398_v49 }
  0x81   :  { %3464 = vmatprep.subr.mxu0 %v5759_v32  ;;  %3512 = vmatprep.subr.mxu1 %v4065_v5 }
  0x82   :  { %3465 = vmatpush3.msra.mxu0 %v5759_v32  ;;  %3513 = vmatpush3.msra.mxu1 %v4065_v5 }
  0x83   :  { %3466 = vmatprep.subr.mxu0 %v5760_v63  ;;  %3514 = vmatprep.subr.mxu1 %v4067_v9 }
  0x84   :  { %3384 = vmatprep.mubr.f32.mxu0 %v4389_v37  ;;  %3434 = vmatprep.mubr.f32.mxu1 %v5761_v36  ;;  %v5767_v36 = vld [vmem:[#allocation54_spill] sm:$0xff]  ;;  %v5773_v37 = vand.u32 4294901760, %v4416_v15 }
  0x85   :  { %3467 = vmatpush3.msra.mxu0 %v5760_v63  ;;  %3515 = vmatpush3.msra.mxu1 %v4067_v9 }
  0x86   :  { %3385 = vmatmul.mubr.f32.gmra.mxu0 %v4398_v49  ;;  %3435 = vmatmul.mubr.f32.gmra.mxu1 %v5762_v30  ;;  %v5768_v30 = vld [vmem:[#allocation58_spill] sm:$0xff]  ;;  %v5774_v49 = vand.u32 4294901760, %v4426_v43 }
  0x87   :  { %3468 = vmatprep.subr.mxu0 %v5763_v13  ;;  %3516 = vmatprep.subr.mxu1 %v4069_v10 }
  0x88   :  { %3469 = vmatpush3.msra.mxu0 %v5763_v13  ;;  %3517 = vmatpush3.msra.mxu1 %v4069_v10 }
  0x89   :  { %3470 = vmatprep.subr.mxu0 %v5764_v33  ;;  %3518 = vmatprep.subr.mxu1 %v4071_v11 }
  0x8a   :  { %3387 = vmatprep.mubr.f32.mxu0 %v4416_v15  ;;  %3437 = vmatprep.mubr.f32.mxu1 %v5765_v39  ;;  %v5771_v39 = vld [vmem:[#allocation63_spill] sm:$0xff]  ;;  %v5777_v15 = vand.u32 4294901760, %v4444_v50 }
  0x8b   :  { %3471 = vmatpush3.msra.mxu0 %v5764_v33  ;;  %3519 = vmatpush3.msra.mxu1 %v4071_v11 }
  0x8c   :  { %3388 = vmatmul.mubr.f32.gmra.mxu0 %v4426_v43  ;;  %3438 = vmatmul.mubr.f32.gmra.mxu1 %v5766_v55  ;;  %v5772_v55 = vld [vmem:[#allocation66_spill] sm:$0xff]  ;;  %v5778_v43 = vand.u32 4294901760, %v4454_v19 }
  0x8d   :  { %3472 = vmatprep.subr.mxu0 %v5767_v36  ;;  %3520 = vmatprep.subr.mxu1 %v4080_v16 }
  0x8e   :  { %3473 = vmatpush3.msra.mxu0 %v5767_v36  ;;  %3521 = vmatpush3.msra.mxu1 %v4080_v16 }
  0x8f   :  { %3474 = vmatprep.subr.mxu0 %v5768_v30  ;;  %3522 = vmatprep.subr.mxu1 %v4102_v24 }
  0x90   :  { %3390 = vmatprep.mubr.f32.mxu0 %v4444_v50  ;;  %3440 = vmatprep.mubr.f32.mxu1 %v5769_v2  ;;  %v5775_v2 = vld [vmem:[#allocation69_spill] sm:$0xff]  ;;  %v5780_v50 = vand.u32 4294901760, %v4482_v29 }
  0x91   :  { %3475 = vmatpush3.msra.mxu0 %v5768_v30  ;;  %3523 = vmatpush3.msra.mxu1 %v4102_v24 }
  0x92   :  { %3391 = vmatmul.mubr.f32.gmra.mxu0 %v4454_v19  ;;  %3441 = vmatmul.mubr.f32.gmra.mxu1 %v5770_v6  ;;  %v5776_v6 = vld [vmem:[#allocation71_spill] sm:$0xff]  ;;  %v5781_v19 = vld [vmem:[#allocation33_spill] sm:$0xff] }
  0x93   :  { %3476 = vmatprep.subr.mxu0 %v5771_v39  ;;  %3524 = vmatprep.subr.mxu1 %v4108_v27 }
  0x94   :  { %3477 = vmatpush3.msra.mxu0 %v5771_v39  ;;  %3525 = vmatpush3.msra.mxu1 %v4108_v27 }
  0x95   :  { %3478 = vmatprep.subr.mxu0 %v5772_v55  ;;  %3526 = vmatprep.subr.mxu1 %v4127_v34 }
  0x96   :  { %3393 = vmatprep.mubr.f32.mxu0 %v4472_v8  ;;  %3443 = vmatprep.mubr.f32.mxu1 %v5773_v37  ;;  %v5779_v37 = vand.u32 4294901760, %v4472_v8  ;;  %v5782_v8 = vld [vmem:[#allocation34_spill] sm:$0xff] }
  0x97   :  { %3479 = vmatpush3.msra.mxu0 %v5772_v55  ;;  %3527 = vmatpush3.msra.mxu1 %v4127_v34 }
  0x98   :  { %3394 = vmatmul.mubr.f32.gmra.mxu0 %v4482_v29  ;;  %3444 = vmatmul.mubr.f32.gmra.mxu1 %v5774_v49 }
  0x99   :  { %3480 = vmatprep.subr.mxu0 %v5775_v2  ;;  %3528 = vmatprep.subr.mxu1 %v4152_v45 }
  0x9a   :  { %3481 = vmatpush3.msra.mxu0 %v5775_v2  ;;  %3529 = vmatpush3.msra.mxu1 %v4152_v45 }
  0x9b   :  { %3482 = vmatprep.subr.mxu0 %v5776_v6  ;;  %3530 = vmatprep.subr.mxu1 %v4159_v48 }
  0x9c   :  { %3446 = vmatprep.mubr.f32.mxu1 %v5777_v15  ;;  %3483 = vmatpush3.msra.mxu0 %v5776_v6 }
  0x9d   :  { %3484 = vmatprep.mubr.f32.mxu0 %v4177_v56  ;;  %3531 = vmatpush3.msra.mxu1 %v4159_v48 }
  0x9e   :  { %3447 = vmatmul.mubr.f32.gmra.mxu1 %v5778_v43  ;;  %3485 = vmatmul.mubr.f32.vlgmr.msra.gmra.mxu0 %v4189_v61 }
  0x9f   :  { %3532 = vmatprep.subr.mxu1 %v4193_v62  ;;  %3449 = vmatprep.mubr.f32.mxu1 %v5779_v37 }
  0xa0   :  { %3533 = vmatpush3.msra.mxu1 %v4193_v62  ;;  %3487 = vmatprep.mubr.f32.mxu0 %v4226_v35 }
  0xa1   :  { %3534 = vmatprep.subr.mxu1 %v4211_v12  ;;  %3564 = vmatprep.subr.mxu0 %v4061_v3 }
  0xa2   :  { %3535 = vmatpush3.msra.mxu1 %v4211_v12  ;;  %3488 = vmatmul.mubr.f32.gmra.mxu0 %v4244_v51 }
  0xa3   :  { %3450 = vmatmul.mubr.f32.gmra.mxu1 %v5780_v50  ;;  %3536 = vmatprep.subr.mxu1 %v5750_v38 }
  0xa4   :  { %3537 = vmatpush3.msra.mxu1 %v5750_v38  ;;  %3490 = vmatprep.mubr.f32.mxu0 %v4272_v25 }
  0xa5   :  { %3538 = vmatprep.subr.mxu1 %v4248_v53  ;;  %3540 = vmatprep.mubr.f32.mxu1 %v4177_v56  ;;  %v5783_v56 = vld [vmem:[#allocation38_spill] sm:$0xff] }
  0xa6   :  { %3539 = vmatpush3.msra.mxu1 %v4248_v53  ;;  %3491 = vmatmul.mubr.f32.gmra.mxu0 %v4291_v58 }
  0xa7   :  { %3541 = vmatmul.mubr.f32.vlgmr.msra.gmra.mxu1 %v4189_v61  ;;  %3493 = vmatprep.mubr.f32.mxu0 %v4326_v28  ;;  %v5784_v61 = vld [vmem:[#allocation42_spill] sm:$0xff] }
  0xa8   :  { %3543 = vmatprep.mubr.f32.mxu1 %v4226_v35  ;;  %3620 = vmatprep.subr.mxu1 %v5781_v19  ;;  %v5785_v35 = vld [vmem:[#allocation45_spill] sm:$0xff] }
  0xa9   :  { %3621 = vmatpush3.msra.mxu1 %v5781_v19  ;;  %3565 = vmatpush3.msra.mxu0 %v4061_v3 }
  0xaa   :  { %3494 = vmatmul.mubr.f32.gmra.mxu0 %v4343_v23  ;;  %3622 = vmatprep.subr.mxu1 %v5782_v8 }
  0xab   :  { %3544 = vmatmul.mubr.f32.gmra.mxu1 %v4244_v51  ;;  %3496 = vmatprep.mubr.f32.mxu0 %v4370_v47  ;;  %v5791_v51 = vld [vmem:[#allocation67_spill] sm:$0xff] }
  0xac   :  { %3546 = vmatprep.mubr.f32.mxu1 %v4272_v25  ;;  %3623 = vmatpush3.msra.mxu1 %v5782_v8  ;;  %v5792_v25 = vld [vmem:[#allocation70_spill] sm:$0xff] }
  0xad   :  { %3624 = vmatprep.subr.mxu1 %v5783_v56  ;;  %3566 = vmatprep.subr.mxu0 %v4063_v4 }
  0xae   :  { %3497 = vmatmul.mubr.f32.gmra.mxu0 %v4380_v31  ;;  %3625 = vmatpush3.msra.mxu1 %v5783_v56 }
  0xaf   :  { %3547 = vmatmul.mubr.f32.gmra.mxu1 %v4291_v58  ;;  %3499 = vmatprep.mubr.f32.mxu0 %v4400_v14  ;;  %v5786_v58 = vld [vmem:[#allocation49_spill] sm:$0xff] }
  0xb0   :  { %3549 = vmatprep.mubr.f32.mxu1 %v4326_v28  ;;  %3626 = vmatprep.subr.mxu1 %v5784_v61  ;;  %v5788_v28 = vld [vmem:[#allocation57_spill] sm:$0xff] }
  0xb1   :  { %3627 = vmatpush3.msra.mxu1 %v5784_v61  ;;  %3567 = vmatpush3.msra.mxu0 %v4063_v4 }
  0xb2   :  { %3500 = vmatmul.mubr.f32.gmra.mxu0 %v4409_v17  ;;  %3628 = vmatprep.subr.mxu1 %v5785_v35 }
  0xb3   :  { %3550 = vmatmul.mubr.f32.gmra.mxu1 %v4343_v23  ;;  %3502 = vmatprep.mubr.f32.mxu0 %v4428_v18  ;;  %v5787_v23 = vld [vmem:[#allocation52_spill] sm:$0xff] }
  0xb4   :  { %3552 = vmatprep.mubr.f32.mxu1 %v4370_v47  ;;  %3629 = vmatpush3.msra.mxu1 %v5785_v35  ;;  %v5793_v47 = vld [vmem:[#allocation72_spill] sm:$0xff] }
  0xb5   :  { %3630 = vmatprep.subr.mxu1 %v5786_v58  ;;  %3568 = vmatprep.subr.mxu0 %v4065_v5 }
  0xb6   :  { %3503 = vmatmul.mubr.f32.gmra.mxu0 %v4437_v44  ;;  %3631 = vmatpush3.msra.mxu1 %v5786_v58 }
  0xb7   :  { %3553 = vmatmul.mubr.f32.gmra.mxu1 %v4380_v31  ;;  %3505 = vmatprep.mubr.f32.mxu0 %v4456_v59  ;;  %v5794_v31 = vld [vmem:[#allocation73_spill] sm:$0xff] }
  0xb8   :  { %3555 = vmatprep.mubr.f32.mxu1 %v4400_v14  ;;  %3632 = vmatprep.subr.mxu1 %v5787_v23  ;;  %v5789_v14 = vld [vmem:[#allocation61_spill] sm:$0xff] }
  0xb9   :  { %3569 = vmatpush3.msra.mxu0 %v4065_v5  ;;  %3633 = vmatpush3.msra.mxu1 %v5787_v23 }
  0xba   :  { %3506 = vmatmul.mubr.f32.gmra.mxu0 %v4465_v41  ;;  %3570 = vmatprep.subr.mxu0 %v4067_v9 }
  0xbb   :  { %3556 = vmatmul.mubr.f32.gmra.mxu1 %v4409_v17  ;;  %3634 = vmatprep.subr.mxu1 %v5788_v28  ;;  %v5790_v17 = vld [vmem:[#allocation65_spill] sm:$0xff] }
  0xbc   :  { %3558 = vmatprep.mubr.f32.mxu1 %v4428_v18  ;;  %3571 = vmatpush3.msra.mxu0 %v4067_v9  ;;  %v5797_v18 = vld [vmem:[#allocation17_spill] sm:$0xff] }
  0xbd   :  { %3635 = vmatpush3.msra.mxu1 %v5788_v28  ;;  %3572 = vmatprep.subr.mxu0 %v4069_v10 }
  0xbe   :  { %3636 = vmatprep.subr.mxu1 %v5789_v14  ;;  %3573 = vmatpush3.msra.mxu0 %v4069_v10 }
  0xbf   :  { %3559 = vmatmul.mubr.f32.gmra.mxu1 %v4437_v44  ;;  %3574 = vmatprep.subr.mxu0 %v4071_v11  ;;  %v5796_v44 = vld [vmem:[#allocation75_spill] sm:$0xff] }
  0xc0   :  { %3561 = vmatprep.mubr.f32.mxu1 %v4456_v59  ;;  %3637 = vmatpush3.msra.mxu1 %v5789_v14 }
  0xc1   :  { %3638 = vmatprep.subr.mxu1 %v5790_v17  ;;  %3575 = vmatpush3.msra.mxu0 %v4071_v11 }
  0xc2   :  { %3639 = vmatpush3.msra.mxu1 %v5790_v17  ;;  %3576 = vmatprep.subr.mxu0 %v4080_v16 }
  0xc3   :  { %3562 = vmatmul.mubr.f32.gmra.mxu1 %v4465_v41  ;;  %3640 = vmatprep.subr.mxu1 %v5791_v51  ;;  %v5795_v41 = vld [vmem:[#allocation74_spill] sm:$0xff] }
  0xc4   :  { %3577 = vmatpush3.msra.mxu0 %v4080_v16  ;;  %3641 = vmatpush3.msra.mxu1 %v5791_v51 }
  0xc5   :  { %3578 = vmatprep.subr.mxu0 %v4102_v24  ;;  %3642 = vmatprep.subr.mxu1 %v5792_v25 }
  0xc6   :  { %3579 = vmatpush3.msra.mxu0 %v4102_v24  ;;  %3643 = vmatpush3.msra.mxu1 %v5792_v25 }
  0xc7   :  { %3580 = vmatprep.subr.mxu0 %v4108_v27  ;;  %3644 = vmatprep.subr.mxu1 %v5793_v47 }
  0xc8   :  { %3581 = vmatpush3.msra.mxu0 %v4108_v27  ;;  %3645 = vmatpush3.msra.mxu1 %v5793_v47 }
  0xc9   :  { %3582 = vmatprep.subr.mxu0 %v4127_v34  ;;  %3646 = vmatprep.subr.mxu1 %v5794_v31 }
  0xca   :  { %3583 = vmatpush3.msra.mxu0 %v4127_v34  ;;  %3647 = vmatpush3.msra.mxu1 %v5794_v31 }
  0xcb   :  { %3584 = vmatprep.subr.mxu0 %v4152_v45  ;;  %3648 = vmatprep.subr.mxu1 %v5795_v41 }
  0xcc   :  { %3585 = vmatpush3.msra.mxu0 %v4152_v45  ;;  %3649 = vmatpush3.msra.mxu1 %v5795_v41 }
  0xcd   :  { %3586 = vmatprep.subr.mxu0 %v4159_v48  ;;  %3650 = vmatprep.subr.mxu1 %v5796_v44 }
  0xce   :  { %3587 = vmatpush3.msra.mxu0 %v4159_v48  ;;  %3651 = vmatpush3.msra.mxu1 %v5796_v44 }
  0xcf   :  { %3588 = vmatprep.subr.mxu0 %v4193_v62  ;;  %3732 = vmatprep.subr.mxu1 %v4061_v3 }
  0xd0   :  { %3589 = vmatpush3.msra.mxu0 %v4193_v62 }
  0xd1   :  { %3590 = vmatprep.subr.mxu0 %v4211_v12 }
  0xd2   :  { %3591 = vmatpush3.msra.mxu0 %v4211_v12 }
  0xd3   :  { %3592 = vmatprep.subr.mxu0 %v5750_v38 }
  0xd4   :  { %3593 = vmatpush3.msra.mxu0 %v5750_v38 }
  0xd5   :  { %3594 = vmatprep.subr.mxu0 %v4248_v53 }
  0xd6   :  { %3595 = vmatpush3.msra.mxu0 %v4248_v53 }
  0xd7   :  { %3676 = vmatprep.subr.mxu0 %v5797_v18 }
  0xff   :  { %v4751_v59 = vpop.f32.mrf.mxu0 }
 0x101   :  { %v4753_v29 = vpop.f32.mrf.mxu0 }
 0x105   :  { %v4755_v49 = vpop.f32.mrf.mxu0 }
 0x107   :  { %v4757_v15 = vpop.f32.mrf.mxu0 }
 0x10a   :  { %v4759_v43 = vpop.f32.mrf.mxu0  ;;  %v4761_v37 = vpop.f32.mrf.mxu1 }
 0x10b   :  { %v473_v16 = vadd.f32 %v4761_v37, %v4751_v59 }
 0x10c   :  { %v4763_v50 = vpop.f32.mrf.mxu0  ;;  %v4765_v19 = vpop.f32.mrf.mxu1 }
 0x10d   :  { %v467_v10 = vadd.f32 %v4765_v19, %v4753_v29 }
 0x110   :  { %v4767_v8 = vpop.f32.mrf.mxu0  ;;  %v4769_v56 = vpop.f32.mrf.mxu1 }
 0x111   :  { %v485_v4 = vadd.f32 %v4769_v56, %v4755_v49 }
 0x112   :  { %v4771_v61 = vpop.f32.mrf.mxu0  ;;  %v4773_v35 = vpop.f32.mrf.mxu1 }
 0x113   :  { %v479_v3 = vadd.f32 %v4773_v35, %v4757_v15 }
 0x116   :  { %v3274_v58 = vpop.f32.mrf.mxu0  ;;  %v4775_v23 = vpop.f32.mrf.mxu1 }
 0x118   :  { %v4777_v28 = vpop.f32.mrf.mxu0  ;;  %v490_v14 = vpop.f32.mrf.mxu1 }
 0x11c   :  { %v3277_v17 = vpop.f32.mrf.mxu0  ;;  %v3327_v51 = vpop.f32.mrf.mxu1 }
 0x11d   :  { %v509_v37 = vadd.f32 %v3327_v51, %v4767_v8 }
 0x11e   :  { %v4779_v25 = vpop.f32.mrf.mxu0  ;;  %v502_v47 = vpop.f32.mrf.mxu1 }
 0x122   :  { %v3280_v31 = vpop.f32.mrf.mxu0  ;;  %v3330_v41 = vpop.f32.mrf.mxu1 }
 0x123   :  { %v4781_v44 = vadd.f32 %v3330_v41, %v3274_v58 }
 0x124   :  { %v285_v6 = vpop.f32.mrf.mxu0  ;;  %v514_v2 = vpop.f32.mrf.mxu1 }
 0x125   :  { %v515_v19 = vadd.f32 %v514_v2, %v4777_v28 }
 0x128   :  { %v3283_v55 = vpop.f32.mrf.mxu0  ;;  %v3333_v39 = vpop.f32.mrf.mxu1 }
 0x129   :  { %v4783_v30 = vadd.f32 %v3333_v39, %v3277_v17 }
 0x12a   :  { %v305_v36 = vpop.f32.mrf.mxu0  ;;  %v526_v33 = vpop.f32.mrf.mxu1 }
 0x12b   :  { %v527_v49 = vadd.f32 %v526_v33, %v4779_v25 }
 0x12e   :  { %v3336_v13 = vpop.f32.mrf.mxu1  ;;  %v3374_v63 = vpop.f32.mrf.mxu0 }
 0x12f   :  { %v4785_v32 = vadd.f32 %v3336_v13, %v3280_v31  ;;  %v668_v9 = vadd.f32 %v3374_v63, %v473_v16 }
 0x130   :  { %v538_v22 = vpop.f32.mrf.mxu1  ;;  %v660_v26 = vpop.f32.mrf.mxu0 }
 0x131   :  { %v4787_v20 = vadd.f32 %v538_v22, %v285_v6  ;;  %v661_v29 = vadd.f32 %v660_v26, %v467_v10 }
 0x134   :  { %v3339_v0 = vpop.f32.mrf.mxu1  ;;  %v3377_v21 = vpop.f32.mrf.mxu0 }
 0x135   :  { %v4789_v58 = vadd.f32 %v3339_v0, %v3283_v55  ;;  %v682_v56 = vadd.f32 %v3377_v21, %v485_v4 }
 0x136   :  { %v550_v41 = vpop.f32.mrf.mxu1  ;;  %v674_v52 = vpop.f32.mrf.mxu0 }
 0x137   :  { %v4791_v57 = vadd.f32 %v550_v41, %v305_v36  ;;  %v675_v15 = vadd.f32 %v674_v52, %v479_v3 }
 0x139   :  { %5798 = vst [vmem:[#allocation62_spill] sm:$0xff] %v4791_v57 }
 0x13a   :  { %v3380_v39 = vpop.f32.mrf.mxu0  ;;  %v3430_v17 = vpop.f32.mrf.mxu1 }
 0x13b   :  { %v863_v16 = vadd.f32 %v3430_v17, %v668_v9 }
 0x13c   :  { %v688_v1 = vpop.f32.mrf.mxu0  ;;  %v854_v40 = vpop.f32.mrf.mxu1 }
 0x140   :  { %v3383_v53 = vpop.f32.mrf.mxu0  ;;  %v3433_v7 = vpop.f32.mrf.mxu1 }
 0x141   :  { %v879_v57 = vadd.f32 %v3433_v7, %v682_v56 }
 0x142   :  { %v702_v13 = vpop.f32.mrf.mxu0  ;;  %v870_v31 = vpop.f32.mrf.mxu1 }
 0x143   :  { %v871_v51 = vadd.f32 %v870_v31, %v675_v15 }
 0x146   :  { %v3386_v38 = vpop.f32.mrf.mxu0  ;;  %v3436_v60 = vpop.f32.mrf.mxu1 }
 0x147   :  { %v724_v9 = vadd.f32 %v3386_v38, %v4781_v44  ;;  %v3937_v38 = vld [vmem:[#allocation2 + $0x8] sm:$0xff]  ;;  %v5805_v44 = vld [vmem:[#allocation62_spill] sm:$0xff] }
 0x148   :  { %v716_v22 = vpop.f32.mrf.mxu0  ;;  %v886_v6 = vpop.f32.mrf.mxu1 }
 0x149   :  { %v717_v33 = vadd.f32 %v716_v22, %v515_v19 }
 0x14c   :  { %v3389_v12 = vpop.f32.mrf.mxu0  ;;  %v3439_v54 = vpop.f32.mrf.mxu1 }
 0x14d   :  { %v738_v3 = vadd.f32 %v3389_v12, %v4783_v30 }
 0x14e   :  { %v730_v0 = vpop.f32.mrf.mxu0  ;;  %v902_v55 = vpop.f32.mrf.mxu1 }
 0x152   :  { %v3392_v62 = vpop.f32.mrf.mxu0  ;;  %v3442_v46 = vpop.f32.mrf.mxu1 }
 0x154   :  { %v744_v36 = vpop.f32.mrf.mxu0  ;;  %v4793_v41 = vpop.f32.mrf.mxu1 }
 0x155   :  { %v919_v30 = vadd.f32 %v4793_v41, %v717_v33 }
 0x158   :  { %v4795_v48 = vpop.f32.mrf.mxu0  ;;  %v4797_v42 = vpop.f32.mrf.mxu1 }
 0x15a   :  { %v4799_v45 = vpop.f32.mrf.mxu0  ;;  %v4801_v34 = vpop.f32.mrf.mxu1 }
 0x15b   :  { %5799 = vst [vmem:[#allocation33_spill] sm:$0xff] %v4799_v45  ;;  %5800 = vst [vmem:[#allocation34_spill] sm:$0xff] %v4801_v34  ;;  %v491_v34 = vadd.f32 %v490_v14, %v4763_v50 }
 0x15e   :  { %v4803_v27 = vpop.f32.mrf.mxu1  ;;  %v3486_v24 = vpop.f32.mrf.mxu0 }
 0x15f   :  { %5801 = vst [vmem:[#allocation38_spill] sm:$0xff] %v4803_v27  ;;  %v497_v27 = vadd.f32 %v4775_v23, %v4759_v43  ;;  %v689_v43 = vadd.f32 %v688_v1, %v491_v34  ;;  %v855_v23 = vadd.f32 %v854_v40, %v661_v29  ;;  %v1100_v50 = vadd.f32 %v3486_v24, %v863_v16  ;;  %v3939_v29 = vld [vmem:[#allocation2 + $0x18] sm:$0xff] }
 0x160   :  { %v4807_v18 = vpop.f32.mrf.mxu1  ;;  %v1093_v11 = vpop.f32.mrf.mxu0  ;;  %v731_v34 = vadd.f32 %v730_v0, %v527_v49  ;;  %v752_v1 = vadd.f32 %v3392_v62, %v4785_v32 }
 0x161   :  { %5802 = vst [vmem:[#allocation42_spill] sm:$0xff] %v4807_v18  ;;  %v503_v18 = vadd.f32 %v502_v47, %v4771_v61  ;;  %v696_v45 = vadd.f32 %v3380_v39, %v497_v27  ;;  %v1094_v26 = vadd.f32 %v1093_v11, %v855_v23  ;;  %v887_v4 = vadd.f32 %v886_v6, %v689_v43  ;;  %v3938_v39 = vld [vmem:[#allocation2] sm:$0xff] }
 0x162   :  { %v3489_v5 = vpop.f32.mrf.mxu0  ;;  %v5806_v62 = vld [vmem:[#allocation33_spill] sm:$0xff]  ;;  %v5808_v6 = vld [vmem:[#allocation34_spill] sm:$0xff] }
 0x163   :  { %v4818_v59 = vpop.f32.mrf.mxu1  ;;  %v703_v8 = vadd.f32 %v702_v13, %v503_v18  ;;  %v895_v10 = vadd.f32 %v3436_v60, %v696_v45  ;;  %v1112_v24 = vadd.f32 %v3489_v5, %v879_v57  ;;  %v927_v18 = vadd.f32 %v3442_v46, %v724_v9 }
 0x164   :  { %5803 = vst [vmem:[#allocation45_spill] sm:$0xff] %v4818_v59  ;;  %v1105_v63 = vpop.f32.mrf.mxu0  ;;  %v710_v59 = vadd.f32 %v3383_v53, %v509_v37  ;;  %v745_v45 = vadd.f32 %v744_v36, %v4787_v20  ;;  %v766_v5 = vadd.f32 %v4795_v48, %v4789_v58  ;;  %v943_v57 = vadd.f32 %v4797_v42, %v738_v3 }
 0x165   :  { %v966_v35 = vpop.f32.mrf.mxu1  ;;  %v903_v53 = vadd.f32 %v902_v55, %v703_v8  ;;  %v1106_v60 = vadd.f32 %v1105_v63, %v871_v51  ;;  %v759_v46 = vadd.f32 %v5806_v62, %v5805_v44  ;;  %v935_v0 = vadd.f32 %v5808_v6, %v731_v34 }
 0x166   :  { %v3492_v14 = vpop.f32.mrf.mxu0  ;;  %v911_v21 = vadd.f32 %v3439_v54, %v710_v59  ;;  %v5809_v55 = vld [vmem:[#allocation38_spill] sm:$0xff] }
 0x167   :  { %v3542_v61 = vpop.f32.mrf.mxu1  ;;  %v4842_v36 = vadd.f32 %v5809_v55, %v752_v1  ;;  %v1124_v58 = vadd.f32 %v3492_v14, %v895_v10  ;;  %v4856_v15 = vadd.f32 %v966_v35, %v759_v46 }
 0x168   :  { %v1277_v2 = vadd.f32 %v3542_v61, %v1100_v50  ;;  %v1117_v28 = vpop.f32.mrf.mxu0  ;;  %v5810_v48 = vld [vmem:[#allocation42_spill] sm:$0xff]  ;;  %v3940_v61 = vld [vmem:[#allocation2 + $0x10] sm:$0xff] }
 0x169   :  { %v1270_v27 = vpop.f32.mrf.mxu1  ;;  %v4845_v42 = vadd.f32 %v5810_v48, %v745_v45  ;;  %v1118_v43 = vadd.f32 %v1117_v28, %v887_v4 }
 0x16a   :  { %v1365_v52 = vmul.f32 0.03125, %v1277_v2  ;;  %v1271_v40 = vadd.f32 %v1270_v27, %v1094_v26  ;;  %v3495_v7 = vpop.f32.mrf.mxu0 }
 0x16b   :  { %v3545_v11 = vpop.f32.mrf.mxu1  ;;  %v5812_v49 = vld [vmem:[#allocation45_spill] sm:$0xff]  ;;  %v1136_v26 = vadd.f32 %v3495_v7, %v911_v21 }
 0x16c   :  { %v4828_v25 = vsub.f32 %v3937_v38, %v1365_v52  ;;  %v1364_v47 = vmul.f32 0.03125, %v1271_v40  ;;  %v1289_v12 = vadd.f32 %v3545_v11, %v1112_v24  ;;  %v1129_v54 = vpop.f32.mrf.mxu0  ;;  %v4854_v56 = vadd.f32 %v5812_v49, %v766_v5  ;;  %v3941_v40 = vld [vmem:[#allocation2 + $0x28] sm:$0xff] }
 0x16d   :  { %v1282_v32 = vpop.f32.mrf.mxu1  ;;  %v1130_v2 = vadd.f32 %v1129_v54, %v903_v53  ;;  %v3942_v54 = vld [vmem:[#allocation2 + $0x20] sm:$0xff] }
 0x16e   :  { %5804 = vst [vmem:[#allocation49_spill] sm:$0xff] %v4828_v25  ;;  %v1397_v20 = vmul.f32 %v4828_v25, %v4828_v25  ;;  %v4838_v17 = vsub.f32 %v3938_v39, %v1364_v47  ;;  %v1367_v13 = vmul.f32 0.03125, %v1289_v12  ;;  %v1283_v31 = vadd.f32 %v1282_v32, %v1106_v60  ;;  %v3498_v22 = vpop.f32.mrf.mxu0  ;;  %v5815_v47 = vld [vmem:[#allocation11_spill] sm:$0xff]  ;;  %v5817_v32 = vld [vmem:[#allocation12_spill] sm:$0xff] }
 0x16f   :  { %v3548_v41 = vpop.f32.mrf.mxu1  ;;  %v1148_v34 = vadd.f32 %v3498_v22, %v927_v18 }
 0x170   :  { %5807 = vst [vmem:[#allocation52_spill] sm:$0xff] %v4838_v17  ;;  %v4847_v59 = vand.u32 4294901760, %v1397_v20  ;;  %v1396_v37 = vmul.f32 %v4838_v17, %v4838_v17  ;;  %v4851_v16 = vsub.f32 %v3939_v29, %v1367_v13  ;;  %v1366_v63 = vmul.f32 0.03125, %v1283_v31  ;;  %v1141_v19 = vpop.f32.mrf.mxu0 }
 0x171   :  { %v1301_v23 = vadd.f32 %v3548_v41, %v1124_v58  ;;  %v1294_v50 = vpop.f32.mrf.mxu1  ;;  %v1142_v11 = vadd.f32 %v1141_v19, %v919_v30  ;;  %v5819_v58 = vld [vmem:[#allocation13_spill] sm:$0xff] }
 0x172   :  { %5811 = vst [vmem:[#allocation57_spill] sm:$0xff] %v4851_v16  ;;  %v4859_v14 = vsub.f32 %v1397_v20, %v4847_v59  ;;  %v4861_v8 = vand.u32 4294901760, %v1396_v37  ;;  %v1399_v51 = vmul.f32 %v4851_v16, %v4851_v16  ;;  %v4865_v9 = vsub.f32 %v3940_v61, %v1366_v63  ;;  %v3501_v10 = vpop.f32.mrf.mxu0  ;;  %v3944_v41 = vld [vmem:[#allocation2 + $0x30] sm:$0xff] }
 0x173   :  { %v1369_v33 = vmul.f32 0.03125, %v1301_v23  ;;  %v1295_v35 = vadd.f32 %v1294_v50, %v1118_v43  ;;  %v3551_v3 = vpop.f32.mrf.mxu1  ;;  %v1160_v60 = vadd.f32 %v3501_v10, %v943_v57  ;;  %v5821_v10 = vld [vmem:[#allocation14_spill] sm:$0xff] }
 0x174   :  { %5813 = vst [vmem:[#allocation61_spill] sm:$0xff] %v4865_v9  ;;  %v5649_v28 = vand.u32 4294901760, %v4859_v14  ;;  %v4869_v4 = vsub.f32 %v1396_v37, %v4861_v8  ;;  %v1398_v27 = vmul.f32 %v4865_v9, %v4865_v9  ;;  %3652 = vmatprep.mubr.f32.mxu1 %v4861_v8  ;;  %v1153_v24 = vpop.f32.mrf.mxu0  ;;  %v4874_v52 = vand.u32 4294901760, %v1399_v51 }
 0x175   :  { %v4876_v21 = vsub.f32 %v3941_v40, %v1369_v33  ;;  %v1368_v7 = vmul.f32 0.03125, %v1295_v35  ;;  %v1313_v53 = vadd.f32 %v3551_v3, %v1136_v26  ;;  %v1306_v1 = vpop.f32.mrf.mxu1  ;;  %3653 = vmatmul.mubr.f32.vlgmr.msra.gmra.mxu1 %v4847_v59  ;;  %v1154_v62 = vadd.f32 %v1153_v24, %v935_v0  ;;  %v3943_v0 = vld [vmem:[#allocation2 + $0x38] sm:$0xff] }
 0x176   :  { %v4879_v45 = vand.u32 4294901760, %v1398_v27  ;;  %v1307_v38 = vadd.f32 %v1306_v1, %v1130_v2  ;;  %3733 = vmatpush3.msra.mxu1 %v5815_v47  ;;  %v3504_v18 = vpop.f32.mrf.mxu0  ;;  %v1506_v30 = vsub.f32 %v4859_v14, %v5649_v28  ;;  %v5650_v13 = vand.u32 4294901760, %v4869_v4  ;;  %v3945_v2 = vld [vmem:[#allocation2 + $0x48] sm:$0xff] }
 0x177   :  { %5814 = vst [vmem:[#allocation65_spill] sm:$0xff] %v4876_v21  ;;  %v1401_v12 = vmul.f32 %v4876_v21, %v4876_v21  ;;  %v4884_v5 = vsub.f32 %v3942_v54, %v1368_v7  ;;  %v1371_v44 = vmul.f32 0.03125, %v1313_v53  ;;  %v3554_v46 = vpop.f32.mrf.mxu1  ;;  %3734 = vmatprep.subr.mxu1 %v5817_v32  ;;  %v4894_v31 = vsub.f32 %v1399_v51, %v4874_v52  ;;  %v5823_v7 = vld [vmem:[#allocation15_spill] sm:$0xff] }
 0x178   :  { %v1370_v57 = vmul.f32 0.03125, %v1307_v38  ;;  %v1325_v20 = vadd.f32 %v3554_v46, %v1148_v34  ;;  %3655 = vmatprep.mubr.f32.mxu1 %v4879_v45  ;;  %3735 = vmatpush3.msra.mxu1 %v5817_v32  ;;  %v1165_v39 = vpop.f32.mrf.mxu0  ;;  %v1496_v49 = vsub.f32 %v4869_v4, %v5650_v13  ;;  %v4911_v43 = vsub.f32 %v1398_v27, %v4879_v45  ;;  %v3952_v13 = vld [vmem:[#allocation2 + $0x78] sm:$0xff] }
 0x179   :  { %5816 = vst [vmem:[#allocation67_spill] sm:$0xff] %v4884_v5  ;;  %v4896_v22 = vand.u32 4294901760, %v1401_v12  ;;  %v1400_v6 = vmul.f32 %v4884_v5, %v4884_v5  ;;  %v4900_v55 = vsub.f32 %v3943_v0, %v1371_v44  ;;  %v1318_v48 = vpop.f32.mrf.mxu1  ;;  %3656 = vmatmul.mubr.f32.gmra.mxu1 %v4874_v52  ;;  %3736 = vmatprep.subr.mxu1 %v5819_v58 }
 0x17a   :  { %v4904_v37 = vsub.f32 %v3944_v41, %v1370_v57  ;;  %v1373_v29 = vmul.f32 0.03125, %v1325_v20  ;;  %v1319_v63 = vadd.f32 %v1318_v48, %v1142_v11  ;;  %3737 = vmatpush3.msra.mxu1 %v5819_v58  ;;  %v3507_v19 = vpop.f32.mrf.mxu0  ;;  %v1172_v51 = vadd.f32 %v3504_v18, %v4842_v36  ;;  %v3946_v11 = vld [vmem:[#allocation2 + $0x40] sm:$0xff]  ;;  %v3947_v20 = vld [vmem:[#allocation2 + $0x58] sm:$0xff] }
 0x17b   :  { %5818 = vst [vmem:[#allocation70_spill] sm:$0xff] %v4900_v55  ;;  %v4913_v23 = vand.u32 4294901760, %v1400_v6  ;;  %v1403_v50 = vmul.f32 %v4900_v55, %v4900_v55  ;;  %v3557_v61 = vpop.f32.mrf.mxu1  ;;  %3738 = vmatprep.subr.mxu1 %v5821_v10  ;;  %v4925_v27 = vsub.f32 %v1401_v12, %v4896_v22  ;;  %v1166_v34 = vadd.f32 %v1165_v39, %v4845_v42 }
 0x17c   :  { %5820 = vst [vmem:[#allocation72_spill] sm:$0xff] %v4904_v37  ;;  %v1402_v26 = vmul.f32 %v4904_v37, %v4904_v37  ;;  %v4921_v33 = vsub.f32 %v3945_v2, %v1373_v29  ;;  %v1372_v35 = vmul.f32 0.03125, %v1319_v63  ;;  %v1337_v3 = vadd.f32 %v3557_v61, %v1160_v60  ;;  %3739 = vmatpush3.msra.mxu1 %v5821_v10  ;;  %v3948_v61 = vld [vmem:[#allocation2 + $0x50] sm:$0xff] }
 0x17d   :  { %v1184_v36 = vadd.f32 %v3507_v19, %v4854_v56  ;;  %v1497_v24 = vand.u32 4294901760, %v1496_v49  ;;  %3658 = vmatprep.mubr.f32.mxu1 %v4913_v23  ;;  %v1330_v40 = vpop.f32.mrf.mxu1  ;;  %3740 = vmatprep.subr.mxu1 %v5823_v7  ;;  %v4931_v53 = vand.u32 4294901760, %v1403_v50  ;;  %v4939_v42 = vsub.f32 %v1400_v6, %v4913_v23  ;;  %v1177_v56 = vpop.f32.mrf.mxu0  ;;  %v5826_v6 = vld [vmem:[#allocation16_spill] sm:$0xff]  ;;  %v5827_v19 = vld [vmem:[#allocation17_spill] sm:$0xff] }
 0x17e   :  { %5822 = vst [vmem:[#allocation73_spill] sm:$0xff] %v4921_v33  ;;  %v4933_v1 = vand.u32 4294901760, %v1402_v26  ;;  %v4935_v60 = vsub.f32 %v3946_v11, %v1372_v35  ;;  %v1375_v38 = vmul.f32 0.03125, %v1337_v3  ;;  %3659 = vmatmul.mubr.f32.gmra.mxu1 %v4896_v22  ;;  %v1331_v18 = vadd.f32 %v1330_v40, %v1154_v62  ;;  %v5829_v35 = vld [vmem:[#allocation18_spill] sm:$0xff] }
 0x17f   :  { %3596 = vmatprep.mubr.f32.mxu0 %v1497_v24  ;;  %v1507_v12 = vand.u32 4294901760, %v1506_v30  ;;  %3741 = vmatpush3.msra.mxu1 %v5823_v7  ;;  %v3560_v54 = vpop.f32.mrf.mxu1  ;;  %v5647_v44 = vand.u32 4294901760, %v4911_v43  ;;  %v1405_v46 = vmul.f32 %v4921_v33, %v4921_v33  ;;  %v5645_v41 = vand.u32 4294901760, %v4894_v31  ;;  %v5830_v24 = vld [vmem:[#allocation19_spill] sm:$0xff] }
 0x180   :  { %5824 = vst [vmem:[#allocation74_spill] sm:$0xff] %v4935_v60  ;;  %v1404_v57 = vmul.f32 %v4935_v60, %v4935_v60  ;;  %v4947_v39 = vsub.f32 %v3947_v20, %v1375_v38  ;;  %3742 = vmatprep.subr.mxu1 %v5826_v6  ;;  %3661 = vmatprep.mubr.f32.mxu1 %v4933_v1  ;;  %v1374_v62 = vmul.f32 0.03125, %v1331_v18 }
 0x181   :  { %3597 = vmatmul.mubr.f32.vlgmr.msra.gmra.mxu0 %v1507_v12  ;;  %v1349_v30 = vadd.f32 %v3560_v54, %v1172_v51  ;;  %v1516_v0 = vsub.f32 %v4911_v43, %v5647_v44  ;;  %3743 = vmatpush3.msra.mxu1 %v5826_v6  ;;  %v1342_v48 = vpop.f32.mrf.mxu1  ;;  %v4957_v29 = vsub.f32 %v1403_v50, %v4931_v53  ;;  %v5831_v54 = vld [vmem:[#allocation20_spill] sm:$0xff] }
 0x182   :  { %5825 = vst [vmem:[#allocation75_spill] sm:$0xff] %v4947_v39  ;;  %v1178_v63 = vadd.f32 %v1177_v56, %v4856_v15  ;;  %3677 = vmatpush3.msra.mxu0 %v5827_v19  ;;  %v1343_v49 = vadd.f32 %v1342_v48, %v1166_v34  ;;  %3662 = vmatmul.mubr.f32.gmra.mxu1 %v4931_v53  ;;  %v4962_v51 = vand.u32 4294901760, %v1404_v57  ;;  %v4974_v34 = vand.u32 4294901760, %v1405_v46  ;;  %v5833_v48 = vld [vmem:[#allocation26_spill] sm:$0xff] }
 0x183   :  { %v4964_v2 = vsub.f32 %v3948_v61, %v1374_v62  ;;  %3678 = vmatprep.subr.mxu0 %v5829_v35  ;;  %v1517_v3 = vand.u32 4294901760, %v1516_v0  ;;  %v1526_v50 = vsub.f32 %v4894_v31, %v5645_v41  ;;  %3744 = vmatprep.subr.mxu1 %v5830_v24  ;;  %v3563_v15 = vpop.f32.mrf.mxu1  ;;  %v4972_v40 = vsub.f32 %v1402_v26, %v4933_v1  ;;  %v3949_v62 = vld [vmem:[#allocation2 + $0x60] sm:$0xff] }
 0x184   :  { %v1377_v11 = vmul.f32 0.03125, %v1349_v30  ;;  %3679 = vmatpush3.msra.mxu0 %v5829_v35  ;;  %v1376_v38 = vmul.f32 0.03125, %v1343_v49  ;;  %3745 = vmatpush3.msra.mxu1 %v5830_v24  ;;  %v1407_v56 = vmul.f32 %v4947_v39, %v4947_v39  ;;  %v5644_v26 = vand.u32 4294901760, %v4939_v42  ;;  %v5834_v35 = vld [vmem:[#allocation21_spill] sm:$0xff]  ;;  %v5851_v39 = vld [vmem:[#allocation44_spill] sm:$0xff] }
 0x185   :  { %5828 = vst [vmem:[#allocation62_spill] sm:$0xff] %v4964_v2  ;;  %v1406_v18 = vmul.f32 %v4964_v2, %v4964_v2  ;;  %3599 = vmatprep.mubr.f32.mxu0 %v1517_v3  ;;  %v1527_v12 = vand.u32 4294901760, %v1526_v50  ;;  %3680 = vmatprep.subr.mxu0 %v5831_v54  ;;  %v1354_v20 = vpop.f32.mrf.mxu1  ;;  %v1361_v0 = vadd.f32 %v3563_v15, %v1184_v36  ;;  %v5646_v50 = vand.u32 4294901760, %v4925_v27 }
 0x186   :  { %v4984_v30 = vsub.f32 %v3949_v62, %v1376_v38  ;;  %3681 = vmatpush3.msra.mxu0 %v5831_v54  ;;  %3746 = vmatprep.subr.mxu1 %v5833_v48  ;;  %v1355_v19 = vadd.f32 %v1354_v20, %v1178_v63  ;;  %v4989_v49 = vsub.f32 %v1404_v57, %v4962_v51  ;;  %v3950_v38 = vld [vmem:[#allocation2 + $0x68] sm:$0xff]  ;;  %v5648_v63 = vand.u32 4294901760, %v4972_v40  ;;  %v5836_v62 = vld [vmem:[#allocation22_spill] sm:$0xff] }
 0x187   :  { %v4991_v61 = vand.u32 4294901760, %v1406_v18  ;;  %3600 = vmatmul.mubr.f32.gmra.mxu0 %v1527_v12  ;;  %3682 = vmatprep.subr.mxu0 %v5834_v35  ;;  %v1536_v3 = vsub.f32 %v4939_v42, %v5644_v26  ;;  %v4998_v54 = vsub.f32 %v3950_v38, %v1377_v11  ;;  %v5006_v15 = vsub.f32 %v1405_v46, %v4974_v34  ;;  %v5838_v46 = vld [vmem:[#allocation28_spill] sm:$0xff] }
 0x188   :  { %5832 = vst [vmem:[#allocation33_spill] sm:$0xff] %v4984_v30  ;;  %v1408_v36 = vmul.f32 %v4984_v30, %v4984_v30  ;;  %3664 = vmatprep.mubr.f32.mxu1 %v4962_v51  ;;  %3683 = vmatpush3.msra.mxu0 %v5834_v35  ;;  %v1378_v57 = vmul.f32 0.03125, %v1355_v19  ;;  %v5008_v12 = vand.u32 4294901760, %v1407_v56  ;;  %v1546_v11 = vsub.f32 %v4925_v27, %v5646_v50  ;;  %v3951_v35 = vld [vmem:[#allocation2 + $0x70] sm:$0xff] }
 0x189   :  { %5835 = vst [vmem:[#allocation34_spill] sm:$0xff] %v4998_v54  ;;  %v1537_v20 = vand.u32 4294901760, %v1536_v3  ;;  %3747 = vmatpush3.msra.mxu1 %v5833_v48  ;;  %3684 = vmatprep.subr.mxu0 %v5836_v62  ;;  %v5016_v38 = vsub.f32 %v1406_v18, %v4991_v61  ;;  %v1379_v19 = vmul.f32 0.03125, %v1361_v0  ;;  %v1556_v3 = vsub.f32 %v4972_v40, %v5648_v63  ;;  %v5840_v63 = vld [vmem:[#allocation32_spill] sm:$0xff] }
 0x18a   :  { %v5018_v26 = vsub.f32 %v3951_v35, %v1378_v57  ;;  %3665 = vmatmul.mubr.f32.gmra.mxu1 %v4974_v34  ;;  %3748 = vmatprep.subr.mxu1 %v5838_v46  ;;  %v1547_v41 = vand.u32 4294901760, %v1546_v11  ;;  %v5653_v50 = vand.u32 4294901760, %v4957_v29  ;;  %v5652_v18 = vand.u32 4294901760, %v4989_v49  ;;  %v5839_v35 = vld [vmem:[#allocation30_spill] sm:$0xff] }
 0x18b   :  { %3602 = vmatprep.mubr.f32.mxu0 %v1537_v20  ;;  %3685 = vmatpush3.msra.mxu0 %v5836_v62  ;;  %v1409_v0 = vmul.f32 %v4998_v54, %v4998_v54  ;;  %v5030_v57 = vand.u32 4294901760, %v1408_v36  ;;  %v1557_v44 = vand.u32 4294901760, %v1556_v3  ;;  %v5656_v62 = vand.u32 4294901760, %v5006_v15  ;;  %v5843_v3 = vld [vmem:[#allocation39_spill] sm:$0xff]  ;;  %v5845_v54 = vld [vmem:[#allocation37_spill] sm:$0xff] }
 0x18c   :  { %5837 = vst [vmem:[#allocation38_spill] sm:$0xff] %v5018_v26  ;;  %3749 = vmatpush3.msra.mxu1 %v5838_v46  ;;  %3686 = vmatprep.subr.mxu0 %v5839_v35  ;;  %v1566_v20 = vsub.f32 %v4957_v29, %v5653_v50  ;;  %v1576_v11 = vsub.f32 %v4989_v49, %v5652_v18 }
 0x18d   :  { %3603 = vmatmul.mubr.f32.gmra.mxu0 %v1547_v41  ;;  %3750 = vmatprep.subr.mxu1 %v5840_v63  ;;  %v5043_v28 = vsub.f32 %v1407_v56, %v5008_v12  ;;  %v5045_v30 = vsub.f32 %v3952_v13, %v1379_v19  ;;  %v1410_v41 = vmul.f32 %v5018_v26, %v5018_v26  ;;  %v5053_v50 = vand.u32 4294901760, %v1409_v0  ;;  %v5842_v13 = vld [vmem:[#allocation31_spill] sm:$0xff] }
 0x18e   :  { %3605 = vmatprep.mubr.f32.mxu0 %v1557_v44  ;;  %3667 = vmatprep.mubr.f32.mxu1 %v4991_v61  ;;  %v1567_v18 = vand.u32 4294901760, %v1566_v20  ;;  %v5056_v56 = vsub.f32 %v1408_v36, %v5030_v57  ;;  %v1577_v19 = vand.u32 4294901760, %v1576_v11  ;;  %v1586_v44 = vsub.f32 %v5006_v15, %v5656_v62 }
 0x18f   :  { %5841 = vst [vmem:[#allocation42_spill] sm:$0xff] %v5045_v30  ;;  %3687 = vmatpush3.msra.mxu0 %v5839_v35  ;;  %3751 = vmatpush3.msra.mxu1 %v5840_v63  ;;  %v1411_v35 = vmul.f32 %v5045_v30, %v5045_v30  ;;  %v5066_v20 = vand.u32 4294901760, %v1410_v41  ;;  %v5844_v36 = vand.u32 4294901760, %v5016_v38  ;;  %v5077_v62 = vsub.f32 %v1409_v0, %v5053_v50 }
 0x190   :  { %3668 = vmatmul.mubr.f32.gmra.mxu1 %v5008_v12  ;;  %3688 = vmatprep.subr.mxu0 %v5842_v13  ;;  %v1587_v30 = vand.u32 4294901760, %v1586_v44  ;;  %v5848_v44 = vld [vmem:[#allocation40_spill] sm:$0xff] }
 0x191   :  { %3606 = vmatmul.mubr.f32.gmra.mxu0 %v1567_v18  ;;  %3752 = vmatprep.subr.mxu1 %v5843_v3  ;;  %v1596_v11 = vsub.f32 %v5016_v38, %v5844_v36  ;;  %v5846_v18 = vld [vmem:[#allocation41_spill] sm:$0xff]  ;;  %v5083_v36 = vand.u32 4294901760, %v1411_v35  ;;  %v5086_v26 = vsub.f32 %v1410_v41, %v5066_v20 }
 0x192   :  { %3689 = vmatpush3.msra.mxu0 %v5842_v13  ;;  %3753 = vmatpush3.msra.mxu1 %v5843_v3  ;;  %v5849_v13 = vld [vmem:[#allocation48_spill] sm:$0xff] }
 0x193   :  { %3690 = vmatprep.subr.mxu0 %v5845_v54  ;;  %3754 = vmatprep.subr.mxu1 %v5846_v18  ;;  %v1597_v0 = vand.u32 4294901760, %v1596_v11  ;;  %v5852_v11 = vld [vmem:[#allocation53_spill] sm:$0xff] }
 0x194   :  { %3608 = vmatprep.mubr.f32.mxu0 %v1577_v19  ;;  %3670 = vmatprep.mubr.f32.mxu1 %v5030_v57  ;;  %v5847_v19 = vand.u32 4294901760, %v5043_v28 }
 0x195   :  { %3691 = vmatpush3.msra.mxu0 %v5845_v54  ;;  %3755 = vmatpush3.msra.mxu1 %v5846_v18  ;;  %v5850_v54 = vand.u32 4294901760, %v5056_v56 }
 0x196   :  { %3609 = vmatmul.mubr.f32.gmra.mxu0 %v1587_v30  ;;  %3671 = vmatmul.mubr.f32.gmra.mxu1 %v5053_v50  ;;  %v1606_v2 = vsub.f32 %v5043_v28, %v5847_v19  ;;  %v5662_v30 = vand.u32 4294901760, %v5077_v62  ;;  %v5103_v19 = vsub.f32 %v1411_v35, %v5083_v36  ;;  %v5853_v35 = vld [vmem:[#allocation47_spill] sm:$0xff] }
 0x197   :  { %3692 = vmatprep.subr.mxu0 %v5848_v44  ;;  %3756 = vmatprep.subr.mxu1 %v5849_v13  ;;  %v1616_v41 = vsub.f32 %v5056_v56, %v5850_v54 }
 0x198   :  { %3693 = vmatpush3.msra.mxu0 %v5848_v44  ;;  %3757 = vmatpush3.msra.mxu1 %v5849_v13  ;;  %v1607_v60 = vand.u32 4294901760, %v1606_v2  ;;  %v5665_v44 = vand.u32 4294901760, %v5086_v26  ;;  %v1626_v33 = vsub.f32 %v5077_v62, %v5662_v30  ;;  %v5855_v2 = vand.u32 4294901760, %v4869_v4  ;;  %v5857_v30 = vld [vmem:[#allocation59_spill] sm:$0xff] }
 0x199   :  { %3694 = vmatprep.subr.mxu0 %v5851_v39  ;;  %3758 = vmatprep.subr.mxu1 %v5852_v11  ;;  %v1617_v54 = vand.u32 4294901760, %v1616_v41  ;;  %v5856_v41 = vld [vmem:[#allocation51_spill] sm:$0xff] }
 0x19a   :  { %3611 = vmatprep.mubr.f32.mxu0 %v1597_v0  ;;  %3673 = vmatprep.mubr.f32.mxu1 %v5066_v20  ;;  %v5854_v0 = vld [vmem:[#allocation55_spill] sm:$0xff]  ;;  %v1627_v37 = vand.u32 4294901760, %v1626_v33  ;;  %v5860_v33 = vand.u32 4294901760, %v4911_v43 }
 0x19b   :  { %3695 = vmatpush3.msra.mxu0 %v5851_v39  ;;  %3759 = vmatpush3.msra.mxu1 %v5852_v11  ;;  %v1636_v39 = vsub.f32 %v5086_v26, %v5665_v44 }
 0x19c   :  { %3612 = vmatmul.mubr.f32.gmra.mxu0 %v1607_v60  ;;  %3674 = vmatmul.mubr.f32.gmra.mxu1 %v5083_v36  ;;  %v1645_v60 = vand.u32 4294901760, %v5103_v19 }
 0x19d   :  { %3696 = vmatprep.subr.mxu0 %v5853_v35  ;;  %3760 = vmatprep.subr.mxu1 %v5854_v0  ;;  %v1637_v55 = vand.u32 4294901760, %v1636_v39  ;;  %v5862_v39 = vld [vmem:[#allocation64_spill] sm:$0xff] }
 0x19e   :  { %3697 = vmatpush3.msra.mxu0 %v5853_v35  ;;  %3761 = vmatpush3.msra.mxu1 %v5854_v0  ;;  %v5858_v35 = vld [vmem:[#allocation56_spill] sm:$0xff]  ;;  %v1646_v44 = vsub.f32 %v5103_v19, %v1645_v60 }
 0x19f   :  { %3764 = vmatprep.mubr.f32.mxu1 %v5855_v2  ;;  %3698 = vmatprep.subr.mxu0 %v5856_v41  ;;  %v5859_v2 = vand.u32 4294901760, %v4859_v14 }
 0x1a0   :  { %3762 = vmatprep.subr.mxu1 %v5857_v30  ;;  %3614 = vmatprep.mubr.f32.mxu0 %v1617_v54  ;;  %v1647_v54 = vand.u32 4294901760, %v1646_v44  ;;  %v5867_v44 = vld [vmem:[#allocation23_spill] sm:$0xff] }
 0x1a1   :  { %3699 = vmatpush3.msra.mxu0 %v5856_v41  ;;  %3763 = vmatpush3.msra.mxu1 %v5857_v30  ;;  %v5863_v41 = vand.u32 4294901760, %v4894_v31 }
 0x1a2   :  { %3615 = vmatmul.mubr.f32.gmra.mxu0 %v1627_v37  ;;  %3700 = vmatprep.subr.mxu0 %v5858_v35  ;;  %v5861_v37 = vld [vmem:[#allocation60_spill] sm:$0xff] }
 0x1a3   :  { %3765 = vmatmul.mubr.f32.vlgmr.msra.gmra.mxu1 %v5859_v2  ;;  %3844 = vmatprep.subr.mxu1 %v5815_v47 }
 0x1a4   :  { %3701 = vmatpush3.msra.mxu0 %v5858_v35  ;;  %3767 = vmatprep.mubr.f32.mxu1 %v5860_v33 }
 0x1a5   :  { %3845 = vmatpush3.msra.mxu1 %v5815_v47  ;;  %3702 = vmatprep.subr.mxu0 %v5861_v37  ;;  %v5864_v47 = vand.u32 4294901760, %v4939_v42 }
 0x1a6   :  { %3846 = vmatprep.subr.mxu1 %v5817_v32  ;;  %3617 = vmatprep.mubr.f32.mxu0 %v1637_v55  ;;  %v5865_v55 = vld [vmem:[#allocation68_spill] sm:$0xff] }
 0x1a7   :  { %3703 = vmatpush3.msra.mxu0 %v5861_v37  ;;  %3847 = vmatpush3.msra.mxu1 %v5817_v32  ;;  %v5866_v32 = vand.u32 4294901760, %v4925_v27 }
 0x1a8   :  { %3618 = vmatmul.mubr.f32.gmra.mxu0 %v1647_v54  ;;  %3704 = vmatprep.subr.mxu0 %v5862_v39 }
 0x1a9   :  { %3768 = vmatmul.mubr.f32.gmra.mxu1 %v5863_v41  ;;  %3848 = vmatprep.subr.mxu1 %v5819_v58 }
 0x1aa   :  { %3705 = vmatpush3.msra.mxu0 %v5862_v39  ;;  %3708 = vmatprep.mubr.f32.mxu0 %v4869_v4  ;;  %v5868_v4 = vand.u32 4294901760, %v4972_v40 }
 0x1ab   :  { %3770 = vmatprep.mubr.f32.mxu1 %v5864_v47  ;;  %3849 = vmatpush3.msra.mxu1 %v5819_v58  ;;  %v5869_v58 = vld [vmem:[#allocation24_spill] sm:$0xff] }
 0x1ac   :  { %3706 = vmatprep.subr.mxu0 %v5865_v55  ;;  %3850 = vmatprep.subr.mxu1 %v5821_v10 }
 0x1ad   :  { %3707 = vmatpush3.msra.mxu0 %v5865_v55  ;;  %3851 = vmatpush3.msra.mxu1 %v5821_v10  ;;  %v5872_v10 = vand.u32 4294901760, %v4989_v49 }
 0x1ae   :  { %3709 = vmatmul.mubr.f32.vlgmr.msra.gmra.mxu0 %v4859_v14  ;;  %3771 = vmatmul.mubr.f32.gmra.mxu1 %v5866_v32  ;;  %v5870_v14 = vand.u32 4294901760, %v4957_v29 }
 0x1af   :  { %3788 = vmatprep.subr.mxu0 %v5867_v44  ;;  %3852 = vmatprep.subr.mxu1 %v5823_v7 }
 0x1b0   :  { %3711 = vmatprep.mubr.f32.mxu0 %v4911_v43  ;;  %3773 = vmatprep.mubr.f32.mxu1 %v5868_v4  ;;  %v5871_v43 = vld [vmem:[#allocation25_spill] sm:$0xff] }
 0x1b1   :  { %3789 = vmatpush3.msra.mxu0 %v5867_v44  ;;  %3853 = vmatpush3.msra.mxu1 %v5823_v7  ;;  %v5873_v7 = vld [vmem:[#allocation27_spill] sm:$0xff] }
 0x1b2   :  { %3790 = vmatprep.subr.mxu0 %v5869_v58  ;;  %3854 = vmatprep.subr.mxu1 %v5826_v6 }
 0x1b3   :  { %3791 = vmatpush3.msra.mxu0 %v5869_v58  ;;  %3855 = vmatpush3.msra.mxu1 %v5826_v6  ;;  %v5876_v6 = vand.u32 4294901760, %v5016_v38 }
 0x1b4   :  { %3712 = vmatmul.mubr.f32.gmra.mxu0 %v4894_v31  ;;  %3774 = vmatmul.mubr.f32.gmra.mxu1 %v5870_v14  ;;  %v5874_v31 = vand.u32 4294901760, %v5006_v15 }
 0x1b5   :  { %3792 = vmatprep.subr.mxu0 %v5871_v43  ;;  %3856 = vmatprep.subr.mxu1 %v5830_v24 }
 0x1b6   :  { %3714 = vmatprep.mubr.f32.mxu0 %v4939_v42  ;;  %3776 = vmatprep.mubr.f32.mxu1 %v5872_v10  ;;  %v5875_v42 = vld [vmem:[#allocation29_spill] sm:$0xff] }
 0x1b7   :  { %3793 = vmatpush3.msra.mxu0 %v5871_v43  ;;  %3857 = vmatpush3.msra.mxu1 %v5830_v24  ;;  %v5877_v24 = vld [vmem:[#allocation35_spill] sm:$0xff] }
 0x1b8   :  { %3794 = vmatprep.subr.mxu0 %v5873_v7  ;;  %3858 = vmatprep.subr.mxu1 %v5833_v48 }
 0x1b9   :  { %3795 = vmatpush3.msra.mxu0 %v5873_v7  ;;  %3859 = vmatpush3.msra.mxu1 %v5833_v48  ;;  %v5880_v48 = vand.u32 4294901760, %v5056_v56 }
 0x1ba   :  { %3715 = vmatmul.mubr.f32.gmra.mxu0 %v4925_v27  ;;  %3777 = vmatmul.mubr.f32.gmra.mxu1 %v5874_v31  ;;  %v5878_v27 = vand.u32 4294901760, %v5043_v28 }
 0x1bb   :  { %3796 = vmatprep.subr.mxu0 %v5875_v42  ;;  %3860 = vmatprep.subr.mxu1 %v5838_v46 }
 0x1bc   :  { %3717 = vmatprep.mubr.f32.mxu0 %v4972_v40  ;;  %3779 = vmatprep.mubr.f32.mxu1 %v5876_v6  ;;  %v5879_v40 = vld [vmem:[#allocation36_spill] sm:$0xff] }
 0x1bd   :  { %3797 = vmatpush3.msra.mxu0 %v5875_v42  ;;  %3861 = vmatpush3.msra.mxu1 %v5838_v46  ;;  %v5881_v46 = vld [vmem:[#allocation43_spill] sm:$0xff] }
 0x1be   :  { %3798 = vmatprep.subr.mxu0 %v5877_v24  ;;  %3862 = vmatprep.subr.mxu1 %v5840_v63 }
 0x1bf   :  { %3799 = vmatpush3.msra.mxu0 %v5877_v24  ;;  %3863 = vmatpush3.msra.mxu1 %v5840_v63  ;;  %v5884_v63 = vand.u32 4294901760, %v5086_v26 }
 0x1c0   :  { %3718 = vmatmul.mubr.f32.gmra.mxu0 %v4957_v29  ;;  %3780 = vmatmul.mubr.f32.gmra.mxu1 %v5878_v27  ;;  %v5882_v29 = vand.u32 4294901760, %v5077_v62 }
 0x1c1   :  { %3800 = vmatprep.subr.mxu0 %v5879_v40  ;;  %3864 = vmatprep.subr.mxu1 %v5843_v3 }
 0x1c2   :  { %3720 = vmatprep.mubr.f32.mxu0 %v4989_v49  ;;  %3782 = vmatprep.mubr.f32.mxu1 %v5880_v48  ;;  %v5883_v49 = vld [vmem:[#allocation46_spill] sm:$0xff] }
 0x1c3   :  { %3801 = vmatpush3.msra.mxu0 %v5879_v40  ;;  %3865 = vmatpush3.msra.mxu1 %v5843_v3  ;;  %v5885_v3 = vld [vmem:[#allocation50_spill] sm:$0xff] }
 0x1c4   :  { %3802 = vmatprep.subr.mxu0 %v5881_v46  ;;  %3866 = vmatprep.subr.mxu1 %v5846_v18 }
 0x1c5   :  { %3803 = vmatpush3.msra.mxu0 %v5881_v46  ;;  %3867 = vmatpush3.msra.mxu1 %v5846_v18  ;;  %v5890_v18 = vld [vmem:[#allocation69_spill] sm:$0xff] }
 0x1c6   :  { %3721 = vmatmul.mubr.f32.gmra.mxu0 %v5006_v15  ;;  %3783 = vmatmul.mubr.f32.gmra.mxu1 %v5882_v29  ;;  %v5886_v15 = vld [vmem:[#allocation54_spill] sm:$0xff] }
 0x1c7   :  { %3804 = vmatprep.subr.mxu0 %v5883_v49  ;;  %3868 = vmatprep.subr.mxu1 %v5849_v13 }
 0x1c8   :  { %3723 = vmatprep.mubr.f32.mxu0 %v5016_v38  ;;  %3785 = vmatprep.mubr.f32.mxu1 %v5884_v63  ;;  %v5887_v38 = vld [vmem:[#allocation58_spill] sm:$0xff] }
 0x1c9   :  { %3805 = vmatpush3.msra.mxu0 %v5883_v49  ;;  %3869 = vmatpush3.msra.mxu1 %v5849_v13 }
 0x1ca   :  { %3806 = vmatprep.subr.mxu0 %v5885_v3  ;;  %3870 = vmatprep.subr.mxu1 %v5852_v11 }
 0x1cb   :  { %3807 = vmatpush3.msra.mxu0 %v5885_v3  ;;  %3871 = vmatpush3.msra.mxu1 %v5852_v11 }
 0x1cc   :  { %3724 = vmatmul.mubr.f32.gmra.mxu0 %v5043_v28  ;;  %3786 = vmatmul.mubr.f32.gmra.mxu1 %v1645_v60  ;;  %v5888_v28 = vld [vmem:[#allocation63_spill] sm:$0xff] }
 0x1cd   :  { %3808 = vmatprep.subr.mxu0 %v5886_v15  ;;  %3872 = vmatprep.subr.mxu1 %v5854_v0 }
 0x1ce   :  { %3726 = vmatprep.mubr.f32.mxu0 %v5056_v56  ;;  %3809 = vmatpush3.msra.mxu0 %v5886_v15  ;;  %v5889_v56 = vld [vmem:[#allocation66_spill] sm:$0xff] }
 0x1cf   :  { %3873 = vmatpush3.msra.mxu1 %v5854_v0  ;;  %3876 = vmatprep.mubr.f32.mxu1 %v4861_v8 }
 0x1d0   :  { %3810 = vmatprep.subr.mxu0 %v5887_v38  ;;  %3874 = vmatprep.subr.mxu1 %v5857_v30 }
 0x1d1   :  { %3811 = vmatpush3.msra.mxu0 %v5887_v38  ;;  %3875 = vmatpush3.msra.mxu1 %v5857_v30 }
 0x1d2   :  { %3727 = vmatmul.mubr.f32.gmra.mxu0 %v5077_v62  ;;  %3812 = vmatprep.subr.mxu0 %v5888_v28 }
 0x1d3   :  { %3877 = vmatmul.mubr.f32.vlgmr.msra.gmra.mxu1 %v4847_v59  ;;  %3729 = vmatprep.mubr.f32.mxu0 %v5086_v26  ;;  %v5891_v26 = vld [vmem:[#allocation71_spill] sm:$0xff] }
 0x1d4   :  { %3813 = vmatpush3.msra.mxu0 %v5888_v28  ;;  %3879 = vmatprep.mubr.f32.mxu1 %v4879_v45 }
 0x1d5   :  { %3814 = vmatprep.subr.mxu0 %v5889_v56 }
 0x1d6   :  { %3815 = vmatpush3.msra.mxu0 %v5889_v56 }
 0x1d7   :  { %3730 = vmatmul.mubr.f32.gmra.mxu0 %v5103_v19  ;;  %3816 = vmatprep.subr.mxu0 %v5890_v18 }
 0x1d8   :  { %3880 = vmatmul.mubr.f32.gmra.mxu1 %v4874_v52  ;;  %3817 = vmatpush3.msra.mxu0 %v5890_v18 }
 0x1d9   :  { %3820 = vmatprep.mubr.f32.mxu0 %v4861_v8  ;;  %3882 = vmatprep.mubr.f32.mxu1 %v4913_v23 }
 0x1da   :  { %3818 = vmatprep.subr.mxu0 %v5891_v26 }
 0x1db   :  { %3819 = vmatpush3.msra.mxu0 %v5891_v26 }
 0x1dc   :  { %3821 = vmatmul.mubr.f32.vlgmr.msra.gmra.mxu0 %v4847_v59  ;;  %3883 = vmatmul.mubr.f32.gmra.mxu1 %v4896_v22 }
 0x1dd   :  { %3823 = vmatprep.mubr.f32.mxu0 %v4879_v45  ;;  %3885 = vmatprep.mubr.f32.mxu1 %v4933_v1 }
 0x1e0   :  { %3824 = vmatmul.mubr.f32.gmra.mxu0 %v4874_v52  ;;  %3886 = vmatmul.mubr.f32.gmra.mxu1 %v4931_v53 }
 0x1e1   :  { %3826 = vmatprep.mubr.f32.mxu0 %v4913_v23  ;;  %3888 = vmatprep.mubr.f32.mxu1 %v4962_v51 }
 0x1e4   :  { %3827 = vmatmul.mubr.f32.gmra.mxu0 %v4896_v22  ;;  %3889 = vmatmul.mubr.f32.gmra.mxu1 %v4974_v34 }
 0x1e5   :  { %3829 = vmatprep.mubr.f32.mxu0 %v4933_v1  ;;  %3891 = vmatprep.mubr.f32.mxu1 %v4991_v61 }
 0x1e8   :  { %3830 = vmatmul.mubr.f32.gmra.mxu0 %v4931_v53  ;;  %3892 = vmatmul.mubr.f32.gmra.mxu1 %v5008_v12 }
 0x1e9   :  { %3832 = vmatprep.mubr.f32.mxu0 %v4962_v51  ;;  %3894 = vmatprep.mubr.f32.mxu1 %v5030_v57 }
 0x1ec   :  { %3833 = vmatmul.mubr.f32.gmra.mxu0 %v4974_v34  ;;  %3895 = vmatmul.mubr.f32.gmra.mxu1 %v5053_v50 }
 0x1ed   :  { %3835 = vmatprep.mubr.f32.mxu0 %v4991_v61  ;;  %3897 = vmatprep.mubr.f32.mxu1 %v5066_v20 }
 0x1f0   :  { %3836 = vmatmul.mubr.f32.gmra.mxu0 %v5008_v12  ;;  %3898 = vmatmul.mubr.f32.gmra.mxu1 %v5083_v36 }
 0x1f1   :  { %3838 = vmatprep.mubr.f32.mxu0 %v5030_v57 }
 0x1f4   :  { %3839 = vmatmul.mubr.f32.gmra.mxu0 %v5053_v50 }
 0x1f5   :  { %3841 = vmatprep.mubr.f32.mxu0 %v5066_v20 }
 0x1f8   :  { %3842 = vmatmul.mubr.f32.gmra.mxu0 %v5083_v36 }
 0x235   :  { %v5280_v59 = vpop.f32.mrf.mxu1 }
 0x237   :  { %v5282_v8 = vpop.f32.mrf.mxu1 }
 0x239   :  { %v5284_v52 = vpop.f32.mrf.mxu1 }
 0x23b   :  { %v5286_v45 = vpop.f32.mrf.mxu1 }
 0x23e   :  { %v5288_v22 = vpop.f32.mrf.mxu1 }
 0x240   :  { %v5290_v23 = vpop.f32.mrf.mxu1 }
 0x241   :  { %v3598_v53 = vpop.f32.mrf.mxu0 }
 0x242   :  { %v5292_v1 = vpop.f32.mrf.mxu1  ;;  %v1807_v25 = vadd.f32 %v5280_v59, %v3598_v53 }
 0x243   :  { %v1499_v51 = vpop.f32.mrf.mxu0 }
 0x244   :  { %v5294_v34 = vpop.f32.mrf.mxu1 }
 0x247   :  { %v3601_v61 = vpop.f32.mrf.mxu0 }
 0x249   :  { %v1519_v50 = vpop.f32.mrf.mxu0 }
 0x24a   :  { %v5296_v12 = vpop.f32.mrf.mxu1 }
 0x24c   :  { %v5298_v57 = vpop.f32.mrf.mxu1 }
 0x24d   :  { %v5300_v62 = vpop.f32.mrf.mxu0 }
 0x24f   :  { %v5302_v20 = vpop.f32.mrf.mxu0 }
 0x250   :  { %v5304_v13 = vpop.f32.mrf.mxu1 }
 0x251   :  { %v5306_v36 = vpop.f32.mrf.mxu0 }
 0x252   :  { %v5308_v30 = vpop.f32.mrf.mxu1 }
 0x253   :  { %v5310_v11 = vpop.f32.mrf.mxu0 }
 0x256   :  { %v5312_v19 = vpop.f32.mrf.mxu0  ;;  %v5314_v0 = vpop.f32.mrf.mxu1 }
 0x258   :  { %v5316_v60 = vpop.f32.mrf.mxu0  ;;  %v5318_v35 = vpop.f32.mrf.mxu1 }
 0x259   :  { %5892 = vst [vmem:[#allocation45_spill] sm:$0xff] %v5318_v35 }
 0x25c   :  { %v5320_v2 = vpop.f32.mrf.mxu0  ;;  %v5322_v33 = vpop.f32.mrf.mxu1 }
 0x25d   :  { %5893 = vst [vmem:[#allocation11_spill] sm:$0xff] %v5322_v33 }
 0x25e   :  { %v5324_v37 = vpop.f32.mrf.mxu0  ;;  %v5326_v54 = vpop.f32.mrf.mxu1 }
 0x25f   :  { %5894 = vst [vmem:[#allocation12_spill] sm:$0xff] %v5326_v54 }
 0x262   :  { %v5328_v39 = vpop.f32.mrf.mxu0 }
 0x263   :  { %v3766_v41 = vpop.f32.mrf.mxu1 }
 0x264   :  { %v5330_v47 = vpop.f32.mrf.mxu0 }
 0x265   :  { %v2188_v55 = vpop.f32.mrf.mxu1 }
 0x268   :  { %v5332_v32 = vpop.f32.mrf.mxu0 }
 0x269   :  { %5895 = vst [vmem:[#allocation13_spill] sm:$0xff] %v5332_v32  ;;  %v3769_v44 = vpop.f32.mrf.mxu1 }
 0x26a   :  { %v5334_v4 = vpop.f32.mrf.mxu0 }
 0x26b   :  { %5896 = vst [vmem:[#allocation14_spill] sm:$0xff] %v5334_v4  ;;  %v2204_v58 = vpop.f32.mrf.mxu1 }
 0x26e   :  { %v3710_v14 = vpop.f32.mrf.mxu0  ;;  %v5336_v43 = vpop.f32.mrf.mxu1 }
 0x26f   :  { %v2002_v54 = vadd.f32 %v3710_v14, %v1807_v25  ;;  %v1831_v25 = vadd.f32 %v5288_v22, %v5300_v62  ;;  %v1837_v22 = vadd.f32 %v5294_v34, %v5310_v11 }
 0x270   :  { %v1994_v10 = vpop.f32.mrf.mxu0  ;;  %v5338_v7 = vpop.f32.mrf.mxu1 }
 0x271   :  { %v2197_v33 = vadd.f32 %v3766_v41, %v2002_v54 }
 0x274   :  { %v3713_v31 = vpop.f32.mrf.mxu0  ;;  %v5340_v42 = vpop.f32.mrf.mxu1 }
 0x276   :  { %v2008_v6 = vpop.f32.mrf.mxu0  ;;  %v5342_v24 = vpop.f32.mrf.mxu1 }
 0x27a   :  { %v3716_v27 = vpop.f32.mrf.mxu0  ;;  %v5344_v40 = vpop.f32.mrf.mxu1 }
 0x27c   :  { %v2022_v48 = vpop.f32.mrf.mxu0  ;;  %v5346_v46 = vpop.f32.mrf.mxu1 }
 0x27d   :  { %5897 = vst [vmem:[#allocation15_spill] sm:$0xff] %v5346_v46 }
 0x280   :  { %v3719_v29 = vpop.f32.mrf.mxu0  ;;  %v5348_v49 = vpop.f32.mrf.mxu1 }
 0x281   :  { %5898 = vst [vmem:[#allocation16_spill] sm:$0xff] %v5348_v49 }
 0x282   :  { %v2036_v63 = vpop.f32.mrf.mxu0  ;;  %v5350_v3 = vpop.f32.mrf.mxu1 }
 0x283   :  { %5899 = vst [vmem:[#allocation17_spill] sm:$0xff] %v5350_v3  ;;  %v1801_v3 = vadd.f32 %v5282_v8, %v1499_v51  ;;  %v1825_v8 = vadd.f32 %v5290_v23, %v5302_v20  ;;  %v1855_v23 = vadd.f32 %v5296_v12, %v5312_v19 }
 0x285   :  { %v1995_v49 = vadd.f32 %v1994_v10, %v1801_v3  ;;  %v2023_v54 = vadd.f32 %v2022_v48, %v1825_v8 }
 0x286   :  { %v5352_v15 = vpop.f32.mrf.mxu0  ;;  %v5354_v38 = vpop.f32.mrf.mxu1 }
 0x287   :  { %5900 = vst [vmem:[#allocation18_spill] sm:$0xff] %v5354_v38  ;;  %v2189_v35 = vadd.f32 %v2188_v55, %v1995_v49  ;;  %v2221_v34 = vadd.f32 %v5338_v7, %v2023_v54  ;;  %v1861_v7 = vadd.f32 %v5308_v30, %v5324_v37 }
 0x288   :  { %v5356_v28 = vpop.f32.mrf.mxu0  ;;  %v5358_v56 = vpop.f32.mrf.mxu1 }
 0x289   :  { %5901 = vst [vmem:[#allocation19_spill] sm:$0xff] %v5358_v56 }
 0x28c   :  { %v5360_v18 = vpop.f32.mrf.mxu0  ;;  %v5362_v26 = vpop.f32.mrf.mxu1 }
 0x28d   :  { %5902 = vst [vmem:[#allocation20_spill] sm:$0xff] %v5362_v26  ;;  %v1819_v26 = vadd.f32 %v5284_v52, %v3601_v61 }
 0x28e   :  { %v5364_v5 = vpop.f32.mrf.mxu0  ;;  %v5366_v21 = vpop.f32.mrf.mxu1 }
 0x28f   :  { %5903 = vst [vmem:[#allocation26_spill] sm:$0xff] %v5364_v5  ;;  %5904 = vst [vmem:[#allocation21_spill] sm:$0xff] %v5366_v21  ;;  %v2016_v46 = vadd.f32 %v3713_v31, %v1819_v26 }
 0x291   :  { %v2213_v10 = vadd.f32 %v3769_v44, %v2016_v46 }
 0x292   :  { %v5368_v9 = vpop.f32.mrf.mxu0 }
 0x293   :  { %5905 = vst [vmem:[#allocation22_spill] sm:$0xff] %v5368_v9  ;;  %v3878_v16 = vpop.f32.mrf.mxu1  ;;  %v1813_v9 = vadd.f32 %v5286_v45, %v1519_v50  ;;  %v1843_v45 = vadd.f32 %v5292_v1, %v5306_v36  ;;  %v2030_v50 = vadd.f32 %v3716_v27, %v1831_v25  ;;  %v2037_v27 = vadd.f32 %v2036_v63, %v1837_v22 }
 0x294   :  { %v5370_v17 = vpop.f32.mrf.mxu0 }
 0x295   :  { %5906 = vst [vmem:[#allocation28_spill] sm:$0xff] %v5370_v17  ;;  %v2604_v38 = vpop.f32.mrf.mxu1  ;;  %v2009_v59 = vadd.f32 %v2008_v6, %v1813_v9  ;;  %v1849_v6 = vadd.f32 %v5298_v57, %v5316_v60  ;;  %v2229_v48 = vadd.f32 %v5336_v43, %v2030_v50 }
 0x297   :  { %v5374_v56 = vpop.f32.mrf.mxu0  ;;  %v2205_v31 = vadd.f32 %v2204_v58, %v2009_v59  ;;  %v2051_v26 = vadd.f32 %v5356_v28, %v1849_v6 }
 0x298   :  { %v3881_v4 = vpop.f32.mrf.mxu1 }
 0x299   :  { %v5377_v5 = vpop.f32.mrf.mxu0 }
 0x29a   :  { %v2616_v21 = vpop.f32.mrf.mxu1  ;;  %v5912_v22 = vld [vmem:[#allocation22_spill] sm:$0xff] }
 0x29c   :  { %v3822_v17 = vpop.f32.mrf.mxu0  ;;  %v3884_v32 = vpop.f32.mrf.mxu1 }
 0x29d   :  { %v2434_v53 = vadd.f32 %v3822_v17, %v2197_v33 }
 0x29e   :  { %v2427_v52 = vpop.f32.mrf.mxu0  ;;  %v2628_v51 = vpop.f32.mrf.mxu1 }
 0x29f   :  { %v2611_v61 = vadd.f32 %v3878_v16, %v2434_v53  ;;  %v2428_v14 = vadd.f32 %v2427_v52, %v2189_v35  ;;  %v2044_v16 = vadd.f32 %v3719_v29, %v1843_v45  ;;  %v1867_v29 = vadd.f32 %v5304_v13, %v5320_v2  ;;  %v5909_v45 = vld [vmem:[#allocation11_spill] sm:$0xff] }
 0x2a0   :  { %v3825_v41 = vpop.f32.mrf.mxu0  ;;  %v3887_v9 = vpop.f32.mrf.mxu1  ;;  %v2237_v13 = vadd.f32 %v5342_v24, %v2037_v27  ;;  %v5916_v27 = vld [vmem:[#allocation28_spill] sm:$0xff] }
 0x2a1   :  { %v2699_v17 = vmul.f32 0.03125, %v2611_v61  ;;  %v2605_v33 = vadd.f32 %v2604_v38, %v2428_v14  ;;  %v2446_v55 = vadd.f32 %v3825_v41, %v2213_v10  ;;  %v2245_v57 = vadd.f32 %v5340_v42, %v2044_v16  ;;  %v5907_v14 = vld [vmem:[#allocation45_spill] sm:$0xff]  ;;  %v5913_v16 = vld [vmem:[#allocation16_spill] sm:$0xff] }
 0x2a2   :  { %v2439_v62 = vpop.f32.mrf.mxu0  ;;  %v2640_v20 = vpop.f32.mrf.mxu1  ;;  %v1879_v42 = vadd.f32 %v5314_v0, %v5328_v39  ;;  %v2072_v8 = vadd.f32 %v5360_v18, %v1867_v29  ;;  %v1873_v24 = vadd.f32 %v5907_v14, %v5330_v47  ;;  %v5908_v10 = vld [vmem:[#allocation13_spill] sm:$0xff]  ;;  %v5910_v0 = vld [vmem:[#allocation15_spill] sm:$0xff] }
 0x2a3   :  { %v2715_v35 = vadd.f32 1e-05, %v2699_v17  ;;  %v2698_v44 = vmul.f32 0.03125, %v2605_v33  ;;  %v2623_v1 = vadd.f32 %v3881_v4, %v2446_v55  ;;  %v2440_v36 = vadd.f32 %v2439_v62, %v2205_v31 }
 0x2a4   :  { %v3828_v58 = vpop.f32.mrf.mxu0  ;;  %v3890_v46 = vpop.f32.mrf.mxu1  ;;  %v2058_v4 = vadd.f32 %v5352_v15, %v1855_v23  ;;  %v2253_v39 = vadd.f32 %v5910_v0, %v2051_v26  ;;  %v2277_v47 = vadd.f32 %v5913_v16, %v2072_v8  ;;  %v5925_v16 = vld [vmem:[#allocation61_spill] sm:$0xff] }
 0x2a5   :  { %3905 = vrsqrt.f32 %v2715_v35  ;;  %v2714_v11 = vadd.f32 1e-05, %v2698_v44  ;;  %v2701_v12 = vmul.f32 0.03125, %v2623_v1  ;;  %v2617_v19 = vadd.f32 %v2616_v21, %v2440_v36  ;;  %v5914_v1 = vld [vmem:[#allocation14_spill] sm:$0xff]  ;;  %v5915_v36 = vld [vmem:[#allocation12_spill] sm:$0xff] }
 0x2a6   :  { %v2458_v49 = vadd.f32 %v3828_v58, %v2229_v48  ;;  %v2451_v3 = vpop.f32.mrf.mxu0  ;;  %v2652_v38 = vpop.f32.mrf.mxu1  ;;  %v2261_v30 = vadd.f32 %v5344_v40, %v2058_v4  ;;  %v5911_v40 = vld [vmem:[#allocation26_spill] sm:$0xff]  ;;  %v1885_v6 = vadd.f32 %v5915_v36, %v5914_v1  ;;  %v2079_v48 = vadd.f32 %v5916_v27, %v1873_v24 }
 0x2a7   :  { %3907 = vrsqrt.f32 %v2714_v11  ;;  %v2717_v60 = vadd.f32 1e-05, %v2701_v12  ;;  %v2700_v43 = vmul.f32 0.03125, %v2617_v19  ;;  %v2452_v63 = vadd.f32 %v2451_v3, %v2221_v34 }
 0x2a8   :  { %v2635_v21 = vadd.f32 %v3884_v32, %v2458_v49  ;;  %v3831_v59 = vpop.f32.mrf.mxu0  ;;  %v3893_v53 = vpop.f32.mrf.mxu1  ;;  %v2065_v31 = vadd.f32 %v5911_v40, %v1861_v7  ;;  %v2093_v49 = vadd.f32 %v5377_v5, %v1885_v6  ;;  %v5919_v7 = vld [vmem:[#allocation49_spill] sm:$0xff]  ;;  %v5430_v5 = vld [vmem:[%s5490_s2] ss:$0 sm:$0xff] }
 0x2a9   :  { %3909 = vrsqrt.f32 %v2717_v60  ;;  %v2716_v2 = vadd.f32 1e-05, %v2700_v43  ;;  %v2629_v15 = vadd.f32 %v2628_v51, %v2452_v63  ;;  %v2470_v25 = vadd.f32 %v3831_v59, %v2245_v57  ;;  %v5917_v57 = vld [vmem:[#allocation17_spill] sm:$0xff] }
 0x2aa   :  { %v2703_v52 = vmul.f32 0.03125, %v2635_v21  ;;  %v2463_v61 = vpop.f32.mrf.mxu0  ;;  %v1891_v51 = vadd.f32 %v5909_v45, %v5908_v10  ;;  %v2664_v54 = vpop.f32.mrf.mxu1  ;;  %v2269_v60 = vadd.f32 %v5917_v57, %v2065_v31 }
 0x2ab   :  { %3911 = vrsqrt.f32 %v2716_v2  ;;  %v2702_v37 = vmul.f32 0.03125, %v2629_v15  ;;  %v2647_v32 = vadd.f32 %v3887_v9, %v2470_v25  ;;  %v2464_v28 = vadd.f32 %v2463_v61, %v2237_v13 }
 0x2ac   :  { %v2719_v50 = vadd.f32 1e-05, %v2703_v52  ;;  %v3834_v41 = vpop.f32.mrf.mxu0  ;;  %v2086_v9 = vadd.f32 %v5912_v22, %v1879_v42  ;;  %v3896_v58 = vpop.f32.mrf.mxu1  ;;  %v5920_v42 = vld [vmem:[#allocation19_spill] sm:$0xff]  ;;  %v5921_v52 = vld [vmem:[#allocation20_spill] sm:$0xff] }
 0x2ad   :  { %v2718_v18 = vadd.f32 1e-05, %v2702_v37  ;;  %v2705_v17 = vmul.f32 0.03125, %v2647_v32  ;;  %v2641_v33 = vadd.f32 %v2640_v20, %v2464_v28  ;;  %v2482_v55 = vadd.f32 %v3834_v41, %v2261_v30  ;;  %v5922_v37 = vld [vmem:[#allocation52_spill] sm:$0xff] }
 0x2ae   :  { %3913 = vrsqrt.f32 %v2719_v50  ;;  %v2475_v23 = vpop.f32.mrf.mxu0  ;;  %v2100_v20 = vadd.f32 %v5374_v56, %v1891_v51  ;;  %v5918_v56 = vld [vmem:[#allocation18_spill] sm:$0xff]  ;;  %v2676_v15 = vpop.f32.mrf.mxu1  ;;  %v2285_v8 = vadd.f32 %v5920_v42, %v2079_v48  ;;  %v5923_v51 = vld [vmem:[#allocation21_spill] sm:$0xff]  ;;  %v5929_v42 = vld [vmem:[#allocation72_spill] sm:$0xff] }
 0x2af   :  { %3915 = vrsqrt.f32 %v2718_v18  ;;  %v2721_v62 = vadd.f32 1e-05, %v2705_v17  ;;  %v2704_v35 = vmul.f32 0.03125, %v2641_v33  ;;  %v2659_v44 = vadd.f32 %v3890_v46, %v2482_v55  ;;  %v5422_v46 = vld [vmem:[%s5489_s1] ss:$0 sm:$0xff]  ;;  %s4023_s1 = smov [#allocation7]  }
 0x2b0   :  { %v2476_v34 = vadd.f32 %v2475_v23, %v2253_v39  ;;  %v3837_v11 = vpop.f32.mrf.mxu0  ;;  %v2293_v63 = vadd.f32 %v5918_v56, %v2086_v9  ;;  %v2309_v61 = vadd.f32 %v5921_v52, %v2100_v20  ;;  %v2301_v50 = vadd.f32 %v5923_v51, %v2093_v49  ;;  %v5924_v39 = vld [vmem:[#allocation57_spill] sm:$0xff]  ;;  %v3899_v55 = vpop.f32.mrf.mxu1  ;;  %v5927_v49 = vld [vmem:[#allocation67_spill] sm:$0xff]  ;;  %v5931_v51 = vld [vmem:[#allocation74_spill] sm:$0xff]  ;;  %s2829_s2 = sshll.u32 %s4023_s1, 4  ;;  %s2830_s2 = int_to_ptr.vmem [resolvable:$true] %s2829_s2 }
 0x2b1   :  { %3917 = vrsqrt.f32 %v2721_v62  ;;  %v2720_v12 = vadd.f32 1e-05, %v2704_v35  ;;  %v2707_v19 = vmul.f32 0.03125, %v2659_v44  ;;  %v2494_v29 = vadd.f32 %v3837_v11, %v2277_v47  ;;  %s3993_s29 = scalar_lea.vmem %s2830_s2, 2048  ;;  %p3998_p11 = scmp.lt.s32.totalorder %s2830_s2, %s2830_s2 }
 0x2b2   :  { %v3906_v4 = vpop.eup %3905  ;;  %v2653_v3 = vadd.f32 %v2652_v38, %v2476_v34  ;;  %v2487_v43 = vpop.f32.mrf.mxu0  ;;  %v5926_v34 = vld [vmem:[#allocation65_spill] sm:$0xff]  ;;  %p3994_p10 = scmp.ne.s32.totalorder %s2830_s2, %s3993_s29  ;;  %p3999_p12 = scmp.lt.s32.totalorder %s3993_s29, %s3993_s29 }
 0x2b3   :  { %v2747_v26 = vmul.f32 %v3906_v4, %v5919_v7  ;;  %3919 = vrsqrt.f32 %v2720_v12  ;;  %v2723_v21 = vadd.f32 1e-05, %v2707_v19  ;;  %v2671_v59 = vadd.f32 %v3893_v53, %v2494_v29  ;;  %v2688_v12 = vpop.f32.mrf.mxu1 }
 0x2b4   :  { %v3908_v13 = vpop.eup %3907  ;;  %v2706_v2 = vmul.f32 0.03125, %v2653_v3  ;;  %v2488_v25 = vadd.f32 %v2487_v43, %v2269_v60  ;;  %v3840_v38 = vpop.f32.mrf.mxu0  ;;  %p4000_p13 = por %p3999_p12, %p3998_p11 }
 0x2b5   :  { %v2770_v30 = vmul.f32 %v5422_v46, %v2747_v26  ;;  %v2746_v32 = vmul.f32 %v3908_v13, %v5922_v37  ;;  %3921 = vrsqrt.f32 %v2723_v21  ;;  %v2709_v53 = vmul.f32 0.03125, %v2671_v59  ;;  %v5928_v26 = vld [vmem:[#allocation70_spill] sm:$0xff] }
 0x2b6   :  { %v3910_v28 = vpop.eup %3909  ;;  %v2722_v14 = vadd.f32 1e-05, %v2706_v2  ;;  %v2665_v24 = vadd.f32 %v2664_v54, %v2488_v25  ;;  %v2506_v10 = vadd.f32 %v3840_v38, %v2293_v63  ;;  %v2499_v45 = vpop.f32.mrf.mxu0  ;;  %p4001_p0 = pnand %p4000_p13, %p3994_p10 }
 0x2b7   :  { %v2793_v41 = vadd.f32 %v5430_v5, %v2770_v30  ;;  %v2769_v0 = vmul.f32 %v5422_v46, %v2746_v32  ;;  %v2749_v18 = vmul.f32 %v3910_v28, %v5924_v39  ;;  %v2725_v17 = vadd.f32 1e-05, %v2709_v53  ;;  %v5930_v53 = vld [vmem:[#allocation73_spill] sm:$0xff] }
 0x2b8   :  { %v3912_v33 = vpop.eup %3911  ;;  %3923 = vrsqrt.f32 %v2722_v14  ;;  %v2708_v40 = vmul.f32 0.03125, %v2665_v24  ;;  %v2683_v31 = vadd.f32 %v3896_v58, %v2506_v10  ;;  %v2500_v22 = vadd.f32 %v2499_v45, %v2285_v8  ;;  %v3843_v9 = vpop.f32.mrf.mxu0 }
 0x2b9   :  { %2809 = vst [vmem:[#allocation7 + $0x8] sm:$0xff] %v2793_v41  ;;  %v2792_v54 = vadd.f32 %v5430_v5, %v2769_v0  ;;  %v2772_v23 = vmul.f32 %v5422_v46, %v2749_v18  ;;  %v2748_v47 = vmul.f32 %v3912_v33, %v5925_v16  ;;  %3925 = vrsqrt.f32 %v2725_v17  ;;  %v5932_v0 = vld [vmem:[#allocation75_spill] sm:$0xff] }
 0x2ba   :  { %v2724_v62 = vadd.f32 1e-05, %v2708_v40  ;;  %v2711_v35 = vmul.f32 0.03125, %v2683_v31  ;;  %v2677_v44 = vadd.f32 %v2676_v15, %v2500_v22  ;;  %v2518_v1 = vadd.f32 %v3843_v9, %v2309_v61  ;;  %v2511_v36 = vpop.f32.mrf.mxu0  ;;  %v5933_v40 = vld [vmem:[#allocation62_spill] sm:$0xff] }
 0x2bb   :  { %v3914_v6 = vpop.eup %3913  ;;  %2808 = vst [vmem:[#allocation7] sm:$0xff] %v2792_v54  ;;  %v2795_v27 = vadd.f32 %v5430_v5, %v2772_v23  ;;  %v2771_v48 = vmul.f32 %v5422_v46, %v2748_v47  ;;  %v2512_v20 = vadd.f32 %v2511_v36, %v2301_v50  ;;  %v5934_v23 = vld [vmem:[#allocation34_spill] sm:$0xff] }
 0x2bc   :  { %v3916_v58 = vpop.eup %3915  ;;  %v2751_v11 = vmul.f32 %v3914_v6, %v5926_v34  ;;  %3927 = vrsqrt.f32 %v2724_v62  ;;  %v2727_v19 = vadd.f32 1e-05, %v2711_v35  ;;  %v2710_v29 = vmul.f32 0.03125, %v2677_v44  ;;  %v5935_v44 = vld [vmem:[#allocation33_spill] sm:$0xff] }
 0x2bd   :  { %2811 = vst [vmem:[#allocation7 + $0x18] sm:$0xff] %v2795_v27  ;;  %v2794_v4 = vadd.f32 %v5430_v5, %v2771_v48  ;;  %v2750_v3 = vmul.f32 %v3916_v58, %v5927_v49  ;;  %v2695_v57 = vadd.f32 %v3899_v55, %v2518_v1  ;;  %v2689_v60 = vadd.f32 %v2688_v12, %v2512_v20  ;;  %v5936_v20 = vld [vmem:[#allocation42_spill] sm:$0xff] }
 0x2be   :  { %v3918_v43 = vpop.eup %3917  ;;  %v2774_v56 = vmul.f32 %v5422_v46, %v2751_v11  ;;  %3929 = vrsqrt.f32 %v2727_v19  ;;  %v2726_v63 = vadd.f32 1e-05, %v2710_v29  ;;  %v5937_v11 = vld [vmem:[#allocation38_spill] sm:$0xff] }
 0x2bf   :  { %2810 = vst [vmem:[#allocation7 + $0x10] sm:$0xff] %v2794_v4  ;;  %v2773_v7 = vmul.f32 %v5422_v46, %v2750_v3  ;;  %v2753_v21 = vmul.f32 %v3918_v43, %v5928_v26  ;;  %v2713_v59 = vmul.f32 0.03125, %v2695_v57  ;;  %v2712_v13 = vmul.f32 0.03125, %v2689_v60 }
 0x2c0   :  { %v3920_v2 = vpop.eup %3919  ;;  %v2797_v15 = vadd.f32 %v5430_v5, %v2774_v56  ;;  %3931 = vrsqrt.f32 %v2726_v63 }
 0x2c1   :  { %v2796_v25 = vadd.f32 %v5430_v5, %v2773_v7  ;;  %v2776_v38 = vmul.f32 %v5422_v46, %v2753_v21  ;;  %v2752_v8 = vmul.f32 %v3920_v2, %v5929_v42  ;;  %v2729_v52 = vadd.f32 1e-05, %v2713_v59 }
 0x2c2   :  { %v3922_v61 = vpop.eup %3921  ;;  %2813 = vst [vmem:[#allocation7 + $0x28] sm:$0xff] %v2797_v15  ;;  %v2728_v30 = vadd.f32 1e-05, %v2712_v13 }
 0x2c3   :  { %2812 = vst [vmem:[#allocation7 + $0x20] sm:$0xff] %v2796_v25  ;;  %v2799_v37 = vadd.f32 %v5430_v5, %v2776_v38  ;;  %v2775_v32 = vmul.f32 %v5422_v46, %v2752_v8  ;;  %v2755_v28 = vmul.f32 %v3922_v61, %v5930_v53  ;;  %3933 = vrsqrt.f32 %v2729_v52 }
 0x2c4   :  { %3935 = vrsqrt.f32 %v2728_v30 }
 0x2c5   :  { %v3924_v14 = vpop.eup %3923  ;;  %2815 = vst [vmem:[#allocation7 + $0x38] sm:$0xff] %v2799_v37  ;;  %v2798_v24 = vadd.f32 %v5430_v5, %v2775_v32  ;;  %v2778_v10 = vmul.f32 %v5422_v46, %v2755_v28 }
 0x2c6   :  { %v3926_v45 = vpop.eup %3925  ;;  %v2754_v50 = vmul.f32 %v3924_v14, %v5931_v51 }
 0x2c7   :  { %2814 = vst [vmem:[#allocation7 + $0x30] sm:$0xff] %v2798_v24  ;;  %v2801_v41 = vadd.f32 %v5430_v5, %v2778_v10  ;;  %v2757_v39 = vmul.f32 %v3926_v45, %v5932_v0 }
 0x2c8   :  { %v2777_v18 = vmul.f32 %v5422_v46, %v2754_v50 }
 0x2c9   :  { %v3928_v17 = vpop.eup %3927  ;;  %2817 = vst [vmem:[#allocation7 + $0x48] sm:$0xff] %v2801_v41  ;;  %v2780_v33 = vmul.f32 %v5422_v46, %v2757_v39 }
 0x2ca   :  { %v2800_v55 = vadd.f32 %v5430_v5, %v2777_v18  ;;  %v2756_v31 = vmul.f32 %v3928_v17, %v5933_v40 }
 0x2cb   :  { %v3930_v22 = vpop.eup %3929  ;;  %v2803_v9 = vadd.f32 %v5430_v5, %v2780_v33 }
 0x2cc   :  { %2816 = vst [vmem:[#allocation7 + $0x40] sm:$0xff] %v2800_v55  ;;  %v2779_v54 = vmul.f32 %v5422_v46, %v2756_v31  ;;  %v2759_v16 = vmul.f32 %v3930_v22, %v5934_v23 }
 0x2cd   :  { %v3932_v47 = vpop.eup %3931  ;;  %2819 = vst [vmem:[#allocation7 + $0x58] sm:$0xff] %v2803_v9 }
 0x2ce   :  { %v2802_v62 = vadd.f32 %v5430_v5, %v2779_v54  ;;  %v2782_v35 = vmul.f32 %v5422_v46, %v2759_v16  ;;  %v2758_v1 = vmul.f32 %v3932_v47, %v5935_v44 }
 0x2d0   :  { %v3934_v36 = vpop.eup %3933  ;;  %2818 = vst [vmem:[#allocation7 + $0x50] sm:$0xff] %v2802_v62  ;;  %v2805_v6 = vadd.f32 %v5430_v5, %v2782_v35  ;;  %v2781_v27 = vmul.f32 %v5422_v46, %v2758_v1 }
 0x2d1   :  { %v3936_v48 = vpop.eup %3935  ;;  %v2761_v58 = vmul.f32 %v3934_v36, %v5936_v20 }
 0x2d2   :  { %2821 = vst [vmem:[#allocation7 + $0x68] sm:$0xff] %v2805_v6  ;;  %v2804_v34 = vadd.f32 %v5430_v5, %v2781_v27  ;;  %v2760_v12 = vmul.f32 %v3936_v48, %v5937_v11 }
 0x2d3   :  { %v2784_v19 = vmul.f32 %v5422_v46, %v2761_v58 }
 0x2d4   :  { %2820 = vst [vmem:[#allocation7 + $0x60] sm:$0xff] %v2804_v34  ;;  %v2783_v29 = vmul.f32 %v5422_v46, %v2760_v12 }
 0x2d5   :  { %v2807_v4 = vadd.f32 %v5430_v5, %v2784_v19 }
 0x2d6   :  { %v2806_v49 = vadd.f32 %v5430_v5, %v2783_v29 }
 0x2d7   :  { %2823 = vst [vmem:[#allocation7 + $0x78] sm:$0xff] %v2807_v4 }
 0x2d8   :  { %2822 = vst [vmem:[#allocation7 + $0x70] sm:$0xff] %v2806_v49 }
 0x2d9   :  { %4004 = shalt.err (!%p4001_p0)
}
 0x2da   :  { %2835 = dma.vmem_to_hbm [thread:$0]  %s2830_s2, 2048, %s5492_s4, [#allocation4], %s4020_s18, %s4020_s18, %s4021_s19  }
 0x2db   :  { %4017 = dma.done.wait [#allocation4], 2048  }
 0x2dc   :  { %4018 = vsyncadd [#allocation4], 4294965248 }
 0x2dd   :  { %2839 = vsyncpa [#allocation3], 1 }
 0x2de   :  { %2840 = vsyncpa [#allocation6], 1 }
 0x2df   :  { %2841 = vsyncpa [#allocation4], 1 }

</bundles_post_ra>
